<compile_context>
chip_gen: v6e
topology: v6e:2x2x1
jax: 0.10.0
libtpu: 0.0.40
codegen_flags: <defaults>
</compile_context>

<pallas_src>
import functools

import jax
import jax.numpy as jnp
from jax import lax
from jax.experimental import pallas as pl
from jax.experimental.pallas import tpu as pltpu


def _softmax_last(x):
    m = jnp.max(x, axis=-1, keepdims=True)
    e = jnp.exp(x - m)
    return e / jnp.sum(e, axis=-1, keepdims=True)


# ---------------------------------------------------------------------------
# Fused kernel: v-projection -> per-head cosine attention -> head-merge ->
#               [x | x_ori] concat ; batch-0 sim_round2 reduction
# ---------------------------------------------------------------------------
def _fused_msa_kernel(xc_ref, wv_ref, out_ref, sim_ref, *,
                      num_heads, sim_scale, sim_thresh):
    x = xc_ref[0].astype(jnp.float32)                 # (N, C)
    wv = wv_ref[...].astype(jnp.float32)              # (C, C)  v-columns of W_qkv_cls
    N, C = x.shape
    D = C // num_heads

    # v_cls in merged (N, C) layout; column block h*D:(h+1)*D is head h.
    v = jnp.dot(x, wv, preferred_element_type=jnp.float32)          # (N, C)

    araw_sum = jnp.zeros((N, N), jnp.float32)
    attn_sum = jnp.zeros((N, N), jnp.float32)
    x_heads = []
    for h in range(num_heads):                        # static unroll (small H)
        v_h = v[:, h * D:(h + 1) * D]                 # (N, D)
        inv_norm = lax.rsqrt(jnp.sum(v_h * v_h, axis=-1, keepdims=True))
        vn_h = v_h * inv_norm
        # cosine similarities: vn_h @ vn_h^T (contract last dims of both operands)
        araw_h = lax.dot_general(vn_h, vn_h, (((1,), (1,)), ((), ())),
                                 preferred_element_type=jnp.float32)  # (N, N)
        attn_h = _softmax_last(sim_scale * araw_h)
        x_heads.append(jnp.dot(attn_h, v_h, preferred_element_type=jnp.float32))
        araw_sum = araw_sum + araw_h
        attn_sum = attn_sum + attn_h

    x_attn = jnp.concatenate(x_heads, axis=-1)        # (N, C) == head-merged attn @ v
    # x_ori (head-merged v_cls) is exactly `v` in this layout -> single lane-dense store.
    out_ref[0] = jnp.concatenate([x_attn, v], axis=-1).astype(out_ref.dtype)

    @pl.when(pl.program_id(0) == 0)                   # sim_round2 only uses batch 0
    def _():
        inv_h = 1.0 / num_heads
        mask = jnp.where(araw_sum * inv_h > sim_thresh, 1.0, 0.0)
        s = _softmax_last(attn_sum * inv_h)
        num = mask * s
        sim_ref[...] = (num / jnp.sum(num, axis=-1, keepdims=True)).astype(sim_ref.dtype)


# ---------------------------------------------------------------------------
# Module forward
# ---------------------------------------------------------------------------
def attention_msa_visual_forward(x_cls, x_reg, params, *, num_heads=8,
                                 sim_scale=25.0, sim_thresh=0.75):
    del x_reg  # feeds only the dead attn_reg branch (never reaches an output)
    B, N, C = x_cls.shape
    assert C % num_heads == 0
    w_v = params["w_qkv_cls"][:, 2 * C:]              # (C, C) v-projection columns

    kern = functools.partial(_fused_msa_kernel, num_heads=num_heads,
                             sim_scale=sim_scale, sim_thresh=sim_thresh)

    proj_flops = 2 * N * C * C
    attn_flops = 4 * N * N * C + 8 * N * N * num_heads
    flops = B * (proj_flops + attn_flops)
    transcendentals = B * num_heads * N * N + N * N
    bytes_accessed = 4 * (B * N * C + C * C + B * N * 2 * C + N * N)

    x_out, sim_round2 = pl.pallas_call(
        kern,
        out_shape=(jax.ShapeDtypeStruct((B, N, 2 * C), x_cls.dtype),
                   jax.ShapeDtypeStruct((N, N), jnp.float32)),
        grid=(B,),
        in_specs=[pl.BlockSpec((1, N, C), lambda b: (b, 0, 0)),
                  pl.BlockSpec((C, C), lambda b: (0, 0))],          # weight resident
        out_specs=(pl.BlockSpec((1, N, 2 * C), lambda b: (b, 0, 0)),
                   # constant-index block: written once (b == 0), stays resident.
                   pl.BlockSpec((N, N), lambda b: (0, 0))),
        compiler_params=pltpu.CompilerParams(dimension_semantics=("arbitrary",)),
        cost_estimate=pl.CostEstimate(flops=flops, transcendentals=transcendentals,
                                      bytes_accessed=bytes_accessed),
    )(x_cls, w_v)
    return x_out, None, sim_round2


# ---------------------------------------------------------------------------
# Parameters (deterministic) and pure-JAX reference for correctness check
# ---------------------------------------------------------------------------
def make_params(key, dim):
    k1, k2 = jax.random.split(key)
    std = (1.0 / dim) ** 0.5
    return {
        "w_qkv_cls": std * jax.random.normal(k1, (dim, 3 * dim), jnp.float32),
        "w_qkv_reg": std * jax.random.normal(k2, (dim, 3 * dim), jnp.float32),
    }


def reference_forward(x_cls, x_reg, params, *, num_heads=8):
    B, N, C = x_cls.shape
    D = C // num_heads
    y = jnp.einsum("bnc,cd->bnd", x_cls, params["w_qkv_cls"])
    qkv = y.reshape(B, N, 3, num_heads, D).transpose(2, 0, 3, 1, 4)
    v = qkv[2]                                                      # (B, H, N, D)
    vn = v / jnp.linalg.norm(v, axis=-1, keepdims=True)
    araw = vn @ jnp.swapaxes(vn, -1, -2)
    attn = jax.nn.softmax(25.0 * araw, axis=-1)
    x = jnp.swapaxes(attn @ v, 1, 2).reshape(B, N, C)
    x_ori = jnp.transpose(v, (0, 2, 1, 3)).reshape(B, N, C)
    x_cls_out = jnp.concatenate([x, x_ori], axis=-1)
    araw_m = jnp.sum(araw, axis=1)[0] / num_heads
    sim_mask = jnp.where(araw_m > 0.75, 1.0, 0.0)
    attn_m = jnp.sum(attn, axis=1)[0] / num_heads
    s = jax.nn.softmax(attn_m, axis=-1)
    sim_round2 = sim_mask * s / jnp.sum(sim_mask * s, axis=-1, keepdims=True)
    return x_cls_out, sim_round2


if __name__ == "__main__":
    key = jax.random.PRNGKey(0)
    kx, kr, kp = jax.random.split(key, 3)

    B, N, C, H = 2, 16, 64, 8          # dim=64, num_heads=8 -> head_dim=8
    x_cls = jax.random.normal(kx, (B, N, C), jnp.float32)
    x_reg = jax.random.normal(kr, (B, N, C), jnp.float32)
    params = make_params(kp, C)

    fwd = jax.jit(functools.partial(attention_msa_visual_forward, num_heads=H))
    out_x, out_none, out_sim = fwd(x_cls, x_reg, params)
    out_x = jax.block_until_ready(out_x)
    out_sim = jax.block_until_ready(out_sim)

    ref_x, ref_sim = reference_forward(x_cls, x_reg, params, num_heads=H)
    assert out_x.shape == (B, N, 2 * C)
    assert out_sim.shape == (N, N)
    assert out_none is None
    assert jnp.allclose(out_x, ref_x, rtol=1e-3, atol=1e-4), "x_cls mismatch vs reference"
    assert jnp.allclose(out_sim, ref_sim, rtol=1e-3, atol=1e-4), "sim_round2 mismatch vs reference"

    print("KERNEL_OK")
</pallas_src>

<mosaic_0001>
module attributes {stable_mosaic.version = 11 : i64} {
  func.func @_fused_msa_kernel(%arg0: i32, %arg1: memref<1x16x64xf32, #tpu.memory_space<vmem>>, %arg2: memref<64x64xf32, #tpu.memory_space<vmem>>, %arg3: memref<1x16x128xf32, #tpu.memory_space<vmem>>, %arg4: memref<16x16xf32, #tpu.memory_space<vmem>>) attributes {dimension_semantics = [#tpu.dimension_semantics<arbitrary>], iteration_bounds = array<i64: 2>, scalar_prefetch = 0 : i64, scratch_operands = 0 : i64, tpu.core_type = #tpu.core_type<tc>, window_params = [{transform_indices = @transform_0, window_bounds = array<i64: 1, 16, 64>}, {pipeline_mode = #tpu.pipeline_mode<synchronous>, transform_indices = @transform_1, window_bounds = array<i64: 64, 64>}, {transform_indices = @transform_2, window_bounds = array<i64: 1, 16, 128>}, {pipeline_mode = #tpu.pipeline_mode<synchronous>, transform_indices = @transform_3, window_bounds = array<i64: 16, 16>}]} {
    %c0 = arith.constant 0 : index
    %c0_0 = arith.constant 0 : index
    %c0_1 = arith.constant 0 : index
    %0 = vector.load %arg1[%c0, %c0_0, %c0_1] : memref<1x16x64xf32, #tpu.memory_space<vmem>>, vector<1x16x64xf32>
    %1 = vector.shape_cast %0 : vector<1x16x64xf32> to vector<16x64xf32>
    %c0_2 = arith.constant 0 : index
    %c0_3 = arith.constant 0 : index
    %2 = vector.load %arg2[%c0_2, %c0_3] : memref<64x64xf32, #tpu.memory_space<vmem>>, vector<64x64xf32>
    %cst = arith.constant dense<0.000000e+00> : vector<16x64xf32>
    %3 = tpu.matmul %1, %2, %cst {dimension_numbers = #tpu.dot_dimension_numbers<[1], [0], [0], [1], [0, 0, 1, 1], [], []>} : vector<16x64xf32>, vector<64x64xf32>, vector<16x64xf32> -> vector<16x64xf32>
    %cst_4 = arith.constant 0.000000e+00 : f32
    %4 = vector.broadcast %cst_4 : f32 to vector<16x16xf32>
    %cst_5 = arith.constant 0.000000e+00 : f32
    %5 = vector.broadcast %cst_5 : f32 to vector<16x16xf32>
    %6 = vector.extract_strided_slice %3 {offsets = [0, 0], sizes = [16, 8], strides = [1, 1]} : vector<16x64xf32> to vector<16x8xf32>
    %7 = arith.mulf %6, %6 : vector<16x8xf32>
    %cst_6 = arith.constant dense<0.000000e+00> : vector<16xf32>
    %8 = vector.multi_reduction <add>, %7, %cst_6 [1] : vector<16x8xf32> to vector<16xf32>
    %9 = vector.shape_cast %8 : vector<16xf32> to vector<16x1xf32>
    %10 = math.rsqrt %9 : vector<16x1xf32>
    %11 = vector.broadcast %10 : vector<16x1xf32> to vector<16x8xf32>
    %12 = arith.mulf %6, %11 : vector<16x8xf32>
    %cst_7 = arith.constant dense<0.000000e+00> : vector<16x16xf32>
    %13 = tpu.matmul %12, %12, %cst_7 {dimension_numbers = #tpu.dot_dimension_numbers<[1], [1], [0], [0], [0, 0, 1, 0], [], []>} : vector<16x8xf32>, vector<16x8xf32>, vector<16x16xf32> -> vector<16x16xf32>
    %cst_8 = arith.constant 2.500000e+01 : f32
    %14 = vector.broadcast %cst_8 : f32 to vector<16x16xf32>
    %15 = arith.mulf %14, %13 : vector<16x16xf32>
    %cst_9 = arith.constant dense<0xFF800000> : vector<16xf32>
    %16 = vector.multi_reduction <maximumf>, %15, %cst_9 [1] : vector<16x16xf32> to vector<16xf32>
    %17 = vector.shape_cast %16 : vector<16xf32> to vector<16x1xf32>
    %18 = vector.broadcast %17 : vector<16x1xf32> to vector<16x16xf32>
    %19 = arith.subf %15, %18 : vector<16x16xf32>
    %20 = math.exp %19 : vector<16x16xf32>
    %cst_10 = arith.constant dense<0.000000e+00> : vector<16xf32>
    %21 = vector.multi_reduction <add>, %20, %cst_10 [1] : vector<16x16xf32> to vector<16xf32>
    %22 = vector.shape_cast %21 : vector<16xf32> to vector<16x1xf32>
    %23 = vector.broadcast %22 : vector<16x1xf32> to vector<16x16xf32>
    %24 = arith.divf %20, %23 : vector<16x16xf32>
    %cst_11 = arith.constant dense<0.000000e+00> : vector<16x8xf32>
    %25 = tpu.matmul %24, %6, %cst_11 {dimension_numbers = #tpu.dot_dimension_numbers<[1], [0], [0], [1], [0, 0, 1, 1], [], []>} : vector<16x16xf32>, vector<16x8xf32>, vector<16x8xf32> -> vector<16x8xf32>
    %26 = arith.addf %4, %13 : vector<16x16xf32>
    %27 = arith.addf %5, %24 : vector<16x16xf32>
    %28 = vector.extract_strided_slice %3 {offsets = [0, 8], sizes = [16, 8], strides = [1, 1]} : vector<16x64xf32> to vector<16x8xf32>
    %29 = arith.mulf %28, %28 : vector<16x8xf32>
    %cst_12 = arith.constant dense<0.000000e+00> : vector<16xf32>
    %30 = vector.multi_reduction <add>, %29, %cst_12 [1] : vector<16x8xf32> to vector<16xf32>
    %31 = vector.shape_cast %30 : vector<16xf32> to vector<16x1xf32>
    %32 = math.rsqrt %31 : vector<16x1xf32>
    %33 = vector.broadcast %32 : vector<16x1xf32> to vector<16x8xf32>
    %34 = arith.mulf %28, %33 : vector<16x8xf32>
    %cst_13 = arith.constant dense<0.000000e+00> : vector<16x16xf32>
    %35 = tpu.matmul %34, %34, %cst_13 {dimension_numbers = #tpu.dot_dimension_numbers<[1], [1], [0], [0], [0, 0, 1, 0], [], []>} : vector<16x8xf32>, vector<16x8xf32>, vector<16x16xf32> -> vector<16x16xf32>
    %cst_14 = arith.constant 2.500000e+01 : f32
    %36 = vector.broadcast %cst_14 : f32 to vector<16x16xf32>
    %37 = arith.mulf %36, %35 : vector<16x16xf32>
    %cst_15 = arith.constant dense<0xFF800000> : vector<16xf32>
    %38 = vector.multi_reduction <maximumf>, %37, %cst_15 [1] : vector<16x16xf32> to vector<16xf32>
    %39 = vector.shape_cast %38 : vector<16xf32> to vector<16x1xf32>
    %40 = vector.broadcast %39 : vector<16x1xf32> to vector<16x16xf32>
    %41 = arith.subf %37, %40 : vector<16x16xf32>
    %42 = math.exp %41 : vector<16x16xf32>
    %cst_16 = arith.constant dense<0.000000e+00> : vector<16xf32>
    %43 = vector.multi_reduction <add>, %42, %cst_16 [1] : vector<16x16xf32> to vector<16xf32>
    %44 = vector.shape_cast %43 : vector<16xf32> to vector<16x1xf32>
    %45 = vector.broadcast %44 : vector<16x1xf32> to vector<16x16xf32>
    %46 = arith.divf %42, %45 : vector<16x16xf32>
    %cst_17 = arith.constant dense<0.000000e+00> : vector<16x8xf32>
    %47 = tpu.matmul %46, %28, %cst_17 {dimension_numbers = #tpu.dot_dimension_numbers<[1], [0], [0], [1], [0, 0, 1, 1], [], []>} : vector<16x16xf32>, vector<16x8xf32>, vector<16x8xf32> -> vector<16x8xf32>
    %48 = arith.addf %26, %35 : vector<16x16xf32>
    %49 = arith.addf %27, %46 : vector<16x16xf32>
    %50 = vector.extract_strided_slice %3 {offsets = [0, 16], sizes = [16, 8], strides = [1, 1]} : vector<16x64xf32> to vector<16x8xf32>
    %51 = arith.mulf %50, %50 : vector<16x8xf32>
    %cst_18 = arith.constant dense<0.000000e+00> : vector<16xf32>
    %52 = vector.multi_reduction <add>, %51, %cst_18 [1] : vector<16x8xf32> to vector<16xf32>
    %53 = vector.shape_cast %52 : vector<16xf32> to vector<16x1xf32>
    %54 = math.rsqrt %53 : vector<16x1xf32>
    %55 = vector.broadcast %54 : vector<16x1xf32> to vector<16x8xf32>
    %56 = arith.mulf %50, %55 : vector<16x8xf32>
    %cst_19 = arith.constant dense<0.000000e+00> : vector<16x16xf32>
    %57 = tpu.matmul %56, %56, %cst_19 {dimension_numbers = #tpu.dot_dimension_numbers<[1], [1], [0], [0], [0, 0, 1, 0], [], []>} : vector<16x8xf32>, vector<16x8xf32>, vector<16x16xf32> -> vector<16x16xf32>
    %cst_20 = arith.constant 2.500000e+01 : f32
    %58 = vector.broadcast %cst_20 : f32 to vector<16x16xf32>
    %59 = arith.mulf %58, %57 : vector<16x16xf32>
    %cst_21 = arith.constant dense<0xFF800000> : vector<16xf32>
    %60 = vector.multi_reduction <maximumf>, %59, %cst_21 [1] : vector<16x16xf32> to vector<16xf32>
    %61 = vector.shape_cast %60 : vector<16xf32> to vector<16x1xf32>
    %62 = vector.broadcast %61 : vector<16x1xf32> to vector<16x16xf32>
    %63 = arith.subf %59, %62 : vector<16x16xf32>
    %64 = math.exp %63 : vector<16x16xf32>
    %cst_22 = arith.constant dense<0.000000e+00> : vector<16xf32>
    %65 = vector.multi_reduction <add>, %64, %cst_22 [1] : vector<16x16xf32> to vector<16xf32>
    %66 = vector.shape_cast %65 : vector<16xf32> to vector<16x1xf32>
    %67 = vector.broadcast %66 : vector<16x1xf32> to vector<16x16xf32>
    %68 = arith.divf %64, %67 : vector<16x16xf32>
    %cst_23 = arith.constant dense<0.000000e+00> : vector<16x8xf32>
    %69 = tpu.matmul %68, %50, %cst_23 {dimension_numbers = #tpu.dot_dimension_numbers<[1], [0], [0], [1], [0, 0, 1, 1], [], []>} : vector<16x16xf32>, vector<16x8xf32>, vector<16x8xf32> -> vector<16x8xf32>
    %70 = arith.addf %48, %57 : vector<16x16xf32>
    %71 = arith.addf %49, %68 : vector<16x16xf32>
    %72 = vector.extract_strided_slice %3 {offsets = [0, 24], sizes = [16, 8], strides = [1, 1]} : vector<16x64xf32> to vector<16x8xf32>
    %73 = arith.mulf %72, %72 : vector<16x8xf32>
    %cst_24 = arith.constant dense<0.000000e+00> : vector<16xf32>
    %74 = vector.multi_reduction <add>, %73, %cst_24 [1] : vector<16x8xf32> to vector<16xf32>
    %75 = vector.shape_cast %74 : vector<16xf32> to vector<16x1xf32>
    %76 = math.rsqrt %75 : vector<16x1xf32>
    %77 = vector.broadcast %76 : vector<16x1xf32> to vector<16x8xf32>
    %78 = arith.mulf %72, %77 : vector<16x8xf32>
    %cst_25 = arith.constant dense<0.000000e+00> : vector<16x16xf32>
    %79 = tpu.matmul %78, %78, %cst_25 {dimension_numbers = #tpu.dot_dimension_numbers<[1], [1], [0], [0], [0, 0, 1, 0], [], []>} : vector<16x8xf32>, vector<16x8xf32>, vector<16x16xf32> -> vector<16x16xf32>
    %cst_26 = arith.constant 2.500000e+01 : f32
    %80 = vector.broadcast %cst_26 : f32 to vector<16x16xf32>
    %81 = arith.mulf %80, %79 : vector<16x16xf32>
    %cst_27 = arith.constant dense<0xFF800000> : vector<16xf32>
    %82 = vector.multi_reduction <maximumf>, %81, %cst_27 [1] : vector<16x16xf32> to vector<16xf32>
    %83 = vector.shape_cast %82 : vector<16xf32> to vector<16x1xf32>
    %84 = vector.broadcast %83 : vector<16x1xf32> to vector<16x16xf32>
    %85 = arith.subf %81, %84 : vector<16x16xf32>
    %86 = math.exp %85 : vector<16x16xf32>
    %cst_28 = arith.constant dense<0.000000e+00> : vector<16xf32>
    %87 = vector.multi_reduction <add>, %86, %cst_28 [1] : vector<16x16xf32> to vector<16xf32>
    %88 = vector.shape_cast %87 : vector<16xf32> to vector<16x1xf32>
    %89 = vector.broadcast %88 : vector<16x1xf32> to vector<16x16xf32>
    %90 = arith.divf %86, %89 : vector<16x16xf32>
    %cst_29 = arith.constant dense<0.000000e+00> : vector<16x8xf32>
    %91 = tpu.matmul %90, %72, %cst_29 {dimension_numbers = #tpu.dot_dimension_numbers<[1], [0], [0], [1], [0, 0, 1, 1], [], []>} : vector<16x16xf32>, vector<16x8xf32>, vector<16x8xf32> -> vector<16x8xf32>
    %92 = arith.addf %70, %79 : vector<16x16xf32>
    %93 = arith.addf %71, %90 : vector<16x16xf32>
    %94 = vector.extract_strided_slice %3 {offsets = [0, 32], sizes = [16, 8], strides = [1, 1]} : vector<16x64xf32> to vector<16x8xf32>
    %95 = arith.mulf %94, %94 : vector<16x8xf32>
    %cst_30 = arith.constant dense<0.000000e+00> : vector<16xf32>
    %96 = vector.multi_reduction <add>, %95, %cst_30 [1] : vector<16x8xf32> to vector<16xf32>
    %97 = vector.shape_cast %96 : vector<16xf32> to vector<16x1xf32>
    %98 = math.rsqrt %97 : vector<16x1xf32>
    %99 = vector.broadcast %98 : vector<16x1xf32> to vector<16x8xf32>
    %100 = arith.mulf %94, %99 : vector<16x8xf32>
    %cst_31 = arith.constant dense<0.000000e+00> : vector<16x16xf32>
    %101 = tpu.matmul %100, %100, %cst_31 {dimension_numbers = #tpu.dot_dimension_numbers<[1], [1], [0], [0], [0, 0, 1, 0], [], []>} : vector<16x8xf32>, vector<16x8xf32>, vector<16x16xf32> -> vector<16x16xf32>
    %cst_32 = arith.constant 2.500000e+01 : f32
    %102 = vector.broadcast %cst_32 : f32 to vector<16x16xf32>
    %103 = arith.mulf %102, %101 : vector<16x16xf32>
    %cst_33 = arith.constant dense<0xFF800000> : vector<16xf32>
    %104 = vector.multi_reduction <maximumf>, %103, %cst_33 [1] : vector<16x16xf32> to vector<16xf32>
    %105 = vector.shape_cast %104 : vector<16xf32> to vector<16x1xf32>
    %106 = vector.broadcast %105 : vector<16x1xf32> to vector<16x16xf32>
    %107 = arith.subf %103, %106 : vector<16x16xf32>
    %108 = math.exp %107 : vector<16x16xf32>
    %cst_34 = arith.constant dense<0.000000e+00> : vector<16xf32>
    %109 = vector.multi_reduction <add>, %108, %cst_34 [1] : vector<16x16xf32> to vector<16xf32>
    %110 = vector.shape_cast %109 : vector<16xf32> to vector<16x1xf32>
    %111 = vector.broadcast %110 : vector<16x1xf32> to vector<16x16xf32>
    %112 = arith.divf %108, %111 : vector<16x16xf32>
    %cst_35 = arith.constant dense<0.000000e+00> : vector<16x8xf32>
    %113 = tpu.matmul %112, %94, %cst_35 {dimension_numbers = #tpu.dot_dimension_numbers<[1], [0], [0], [1], [0, 0, 1, 1], [], []>} : vector<16x16xf32>, vector<16x8xf32>, vector<16x8xf32> -> vector<16x8xf32>
    %114 = arith.addf %92, %101 : vector<16x16xf32>
    %115 = arith.addf %93, %112 : vector<16x16xf32>
    %116 = vector.extract_strided_slice %3 {offsets = [0, 40], sizes = [16, 8], strides = [1, 1]} : vector<16x64xf32> to vector<16x8xf32>
    %117 = arith.mulf %116, %116 : vector<16x8xf32>
    %cst_36 = arith.constant dense<0.000000e+00> : vector<16xf32>
    %118 = vector.multi_reduction <add>, %117, %cst_36 [1] : vector<16x8xf32> to vector<16xf32>
    %119 = vector.shape_cast %118 : vector<16xf32> to vector<16x1xf32>
    %120 = math.rsqrt %119 : vector<16x1xf32>
    %121 = vector.broadcast %120 : vector<16x1xf32> to vector<16x8xf32>
    %122 = arith.mulf %116, %121 : vector<16x8xf32>
    %cst_37 = arith.constant dense<0.000000e+00> : vector<16x16xf32>
    %123 = tpu.matmul %122, %122, %cst_37 {dimension_numbers = #tpu.dot_dimension_numbers<[1], [1], [0], [0], [0, 0, 1, 0], [], []>} : vector<16x8xf32>, vector<16x8xf32>, vector<16x16xf32> -> vector<16x16xf32>
    %cst_38 = arith.constant 2.500000e+01 : f32
    %124 = vector.broadcast %cst_38 : f32 to vector<16x16xf32>
    %125 = arith.mulf %124, %123 : vector<16x16xf32>
    %cst_39 = arith.constant dense<0xFF800000> : vector<16xf32>
    %126 = vector.multi_reduction <maximumf>, %125, %cst_39 [1] : vector<16x16xf32> to vector<16xf32>
    %127 = vector.shape_cast %126 : vector<16xf32> to vector<16x1xf32>
    %128 = vector.broadcast %127 : vector<16x1xf32> to vector<16x16xf32>
    %129 = arith.subf %125, %128 : vector<16x16xf32>
    %130 = math.exp %129 : vector<16x16xf32>
    %cst_40 = arith.constant dense<0.000000e+00> : vector<16xf32>
    %131 = vector.multi_reduction <add>, %130, %cst_40 [1] : vector<16x16xf32> to vector<16xf32>
    %132 = vector.shape_cast %131 : vector<16xf32> to vector<16x1xf32>
    %133 = vector.broadcast %132 : vector<16x1xf32> to vector<16x16xf32>
    %134 = arith.divf %130, %133 : vector<16x16xf32>
    %cst_41 = arith.constant dense<0.000000e+00> : vector<16x8xf32>
    %135 = tpu.matmul %134, %116, %cst_41 {dimension_numbers = #tpu.dot_dimension_numbers<[1], [0], [0], [1], [0, 0, 1, 1], [], []>} : vector<16x16xf32>, vector<16x8xf32>, vector<16x8xf32> -> vector<16x8xf32>
    %136 = arith.addf %114, %123 : vector<16x16xf32>
    %137 = arith.addf %115, %134 : vector<16x16xf32>
    %138 = vector.extract_strided_slice %3 {offsets = [0, 48], sizes = [16, 8], strides = [1, 1]} : vector<16x64xf32> to vector<16x8xf32>
    %139 = arith.mulf %138, %138 : vector<16x8xf32>
    %cst_42 = arith.constant dense<0.000000e+00> : vector<16xf32>
    %140 = vector.multi_reduction <add>, %139, %cst_42 [1] : vector<16x8xf32> to vector<16xf32>
    %141 = vector.shape_cast %140 : vector<16xf32> to vector<16x1xf32>
    %142 = math.rsqrt %141 : vector<16x1xf32>
    %143 = vector.broadcast %142 : vector<16x1xf32> to vector<16x8xf32>
    %144 = arith.mulf %138, %143 : vector<16x8xf32>
    %cst_43 = arith.constant dense<0.000000e+00> : vector<16x16xf32>
    %145 = tpu.matmul %144, %144, %cst_43 {dimension_numbers = #tpu.dot_dimension_numbers<[1], [1], [0], [0], [0, 0, 1, 0], [], []>} : vector<16x8xf32>, vector<16x8xf32>, vector<16x16xf32> -> vector<16x16xf32>
    %cst_44 = arith.constant 2.500000e+01 : f32
    %146 = vector.broadcast %cst_44 : f32 to vector<16x16xf32>
    %147 = arith.mulf %146, %145 : vector<16x16xf32>
    %cst_45 = arith.constant dense<0xFF800000> : vector<16xf32>
    %148 = vector.multi_reduction <maximumf>, %147, %cst_45 [1] : vector<16x16xf32> to vector<16xf32>
    %149 = vector.shape_cast %148 : vector<16xf32> to vector<16x1xf32>
    %150 = vector.broadcast %149 : vector<16x1xf32> to vector<16x16xf32>
    %151 = arith.subf %147, %150 : vector<16x16xf32>
    %152 = math.exp %151 : vector<16x16xf32>
    %cst_46 = arith.constant dense<0.000000e+00> : vector<16xf32>
    %153 = vector.multi_reduction <add>, %152, %cst_46 [1] : vector<16x16xf32> to vector<16xf32>
    %154 = vector.shape_cast %153 : vector<16xf32> to vector<16x1xf32>
    %155 = vector.broadcast %154 : vector<16x1xf32> to vector<16x16xf32>
    %156 = arith.divf %152, %155 : vector<16x16xf32>
    %cst_47 = arith.constant dense<0.000000e+00> : vector<16x8xf32>
    %157 = tpu.matmul %156, %138, %cst_47 {dimension_numbers = #tpu.dot_dimension_numbers<[1], [0], [0], [1], [0, 0, 1, 1], [], []>} : vector<16x16xf32>, vector<16x8xf32>, vector<16x8xf32> -> vector<16x8xf32>
    %158 = arith.addf %136, %145 : vector<16x16xf32>
    %159 = arith.addf %137, %156 : vector<16x16xf32>
    %160 = vector.extract_strided_slice %3 {offsets = [0, 56], sizes = [16, 8], strides = [1, 1]} : vector<16x64xf32> to vector<16x8xf32>
    %161 = arith.mulf %160, %160 : vector<16x8xf32>
    %cst_48 = arith.constant dense<0.000000e+00> : vector<16xf32>
    %162 = vector.multi_reduction <add>, %161, %cst_48 [1] : vector<16x8xf32> to vector<16xf32>
    %163 = vector.shape_cast %162 : vector<16xf32> to vector<16x1xf32>
    %164 = math.rsqrt %163 : vector<16x1xf32>
    %165 = vector.broadcast %164 : vector<16x1xf32> to vector<16x8xf32>
    %166 = arith.mulf %160, %165 : vector<16x8xf32>
    %cst_49 = arith.constant dense<0.000000e+00> : vector<16x16xf32>
    %167 = tpu.matmul %166, %166, %cst_49 {dimension_numbers = #tpu.dot_dimension_numbers<[1], [1], [0], [0], [0, 0, 1, 0], [], []>} : vector<16x8xf32>, vector<16x8xf32>, vector<16x16xf32> -> vector<16x16xf32>
    %cst_50 = arith.constant 2.500000e+01 : f32
    %168 = vector.broadcast %cst_50 : f32 to vector<16x16xf32>
    %169 = arith.mulf %168, %167 : vector<16x16xf32>
    %cst_51 = arith.constant dense<0xFF800000> : vector<16xf32>
    %170 = vector.multi_reduction <maximumf>, %169, %cst_51 [1] : vector<16x16xf32> to vector<16xf32>
    %171 = vector.shape_cast %170 : vector<16xf32> to vector<16x1xf32>
    %172 = vector.broadcast %171 : vector<16x1xf32> to vector<16x16xf32>
    %173 = arith.subf %169, %172 : vector<16x16xf32>
    %174 = math.exp %173 : vector<16x16xf32>
    %cst_52 = arith.constant dense<0.000000e+00> : vector<16xf32>
    %175 = vector.multi_reduction <add>, %174, %cst_52 [1] : vector<16x16xf32> to vector<16xf32>
    %176 = vector.shape_cast %175 : vector<16xf32> to vector<16x1xf32>
    %177 = vector.broadcast %176 : vector<16x1xf32> to vector<16x16xf32>
    %178 = arith.divf %174, %177 : vector<16x16xf32>
    %cst_53 = arith.constant dense<0.000000e+00> : vector<16x8xf32>
    %179 = tpu.matmul %178, %160, %cst_53 {dimension_numbers = #tpu.dot_dimension_numbers<[1], [0], [0], [1], [0, 0, 1, 1], [], []>} : vector<16x16xf32>, vector<16x8xf32>, vector<16x8xf32> -> vector<16x8xf32>
    %180 = arith.addf %158, %167 : vector<16x16xf32>
    %181 = arith.addf %159, %178 : vector<16x16xf32>
    %182 = tpu.concatenate %25, %47, %69, %91, %113, %135, %157, %179 in 1 : vector<16x8xf32>, vector<16x8xf32>, vector<16x8xf32>, vector<16x8xf32>, vector<16x8xf32>, vector<16x8xf32>, vector<16x8xf32>, vector<16x8xf32> -> vector<16x64xf32>
    %183 = tpu.concatenate %182, %3 in 1 : vector<16x64xf32>, vector<16x64xf32> -> vector<16x128xf32>
    %c0_54 = arith.constant 0 : index
    %c0_55 = arith.constant 0 : index
    %c0_56 = arith.constant 0 : index
    %184 = vector.load %arg3[%c0_54, %c0_55, %c0_56] : memref<1x16x128xf32, #tpu.memory_space<vmem>>, vector<1x16x128xf32>
    %185 = vector.shape_cast %184 : vector<1x16x128xf32> to vector<16x128xf32>
    %186 = vector.shape_cast %183 : vector<16x128xf32> to vector<1x16x128xf32>
    tpu.vector_store %arg3[%c0_54, %c0_55, %c0_56], %186 {strides = array<i32>} : memref<1x16x128xf32, #tpu.memory_space<vmem>>, vector<1x16x128xf32>,
    %c0_i32 = arith.constant 0 : i32
    %187 = arith.cmpi eq, %arg0, %c0_i32 : i32
    %188 = arith.extui %187 : i1 to i32
    %c0_i32_57 = arith.constant 0 : i32
    %189 = arith.cmpi ne, %188, %c0_i32_57 : i32
    scf.if %189 {
      %cst_58 = arith.constant 1.250000e-01 : f32
      %190 = vector.broadcast %cst_58 : f32 to vector<16x16xf32>
      %191 = arith.mulf %180, %190 : vector<16x16xf32>
      %cst_59 = arith.constant 7.500000e-01 : f32
      %192 = vector.broadcast %cst_59 : f32 to vector<16x16xf32>
      %193 = arith.cmpf ogt, %191, %192 : vector<16x16xf32>
      %cst_60 = arith.constant 1.000000e+00 : f32
      %cst_61 = arith.constant 0.000000e+00 : f32
      %194 = vector.broadcast %cst_60 : f32 to vector<16x16xf32>
      %195 = vector.broadcast %cst_61 : f32 to vector<16x16xf32>
      %196 = arith.select %193, %194, %195 : vector<16x16xi1>, vector<16x16xf32>
      %cst_62 = arith.constant 1.250000e-01 : f32
      %197 = vector.broadcast %cst_62 : f32 to vector<16x16xf32>
      %198 = arith.mulf %181, %197 : vector<16x16xf32>
      %cst_63 = arith.constant dense<0xFF800000> : vector<16xf32>
      %199 = vector.multi_reduction <maximumf>, %198, %cst_63 [1] : vector<16x16xf32> to vector<16xf32>
      %200 = vector.shape_cast %199 : vector<16xf32> to vector<16x1xf32>
      %201 = vector.broadcast %200 : vector<16x1xf32> to vector<16x16xf32>
      %202 = arith.subf %198, %201 : vector<16x16xf32>
      %203 = math.exp %202 : vector<16x16xf32>
      %cst_64 = arith.constant dense<0.000000e+00> : vector<16xf32>
      %204 = vector.multi_reduction <add>, %203, %cst_64 [1] : vector<16x16xf32> to vector<16xf32>
      %205 = vector.shape_cast %204 : vector<16xf32> to vector<16x1xf32>
      %206 = vector.broadcast %205 : vector<16x1xf32> to vector<16x16xf32>
      %207 = arith.divf %203, %206 : vector<16x16xf32>
      %208 = arith.mulf %196, %207 : vector<16x16xf32>
      %cst_65 = arith.constant dense<0.000000e+00> : vector<16xf32>
      %209 = vector.multi_reduction <add>, %208, %cst_65 [1] : vector<16x16xf32> to vector<16xf32>
      %210 = vector.shape_cast %209 : vector<16xf32> to vector<16x1xf32>
      %211 = vector.broadcast %210 : vector<16x1xf32> to vector<16x16xf32>
      %212 = arith.divf %208, %211 : vector<16x16xf32>
      %c0_66 = arith.constant 0 : index
      %c0_67 = arith.constant 0 : index
      %213 = vector.load %arg4[%c0_66, %c0_67] : memref<16x16xf32, #tpu.memory_space<vmem>>, vector<16x16xf32>
      tpu.vector_store %arg4[%c0_66, %c0_67], %212 {strides = array<i32>} : memref<16x16xf32, #tpu.memory_space<vmem>>, vector<16x16xf32>,
    } else {
    }
    return
  }
  func.func @transform_0(%arg0: i32) -> (i32, i32, i32) {
    %c0_i32 = arith.constant 0 : i32
    %c0_i32_0 = arith.constant 0 : i32
    %c0_i32_1 = arith.constant 0 : i32
    return %arg0, %c0_i32, %c0_i32_0 : i32, i32, i32
  }
  func.func @transform_1(%arg0: i32) -> (i32, i32) {
    %c0_i32 = arith.constant 0 : i32
    %c0_i32_0 = arith.constant 0 : i32
    %c0_i32_1 = arith.constant 0 : i32
    return %c0_i32, %c0_i32_0 : i32, i32
  }
  func.func @transform_2(%arg0: i32) -> (i32, i32, i32) {
    %c0_i32 = arith.constant 0 : i32
    %c0_i32_0 = arith.constant 0 : i32
    %c0_i32_1 = arith.constant 0 : i32
    return %arg0, %c0_i32, %c0_i32_0 : i32, i32, i32
  }
  func.func @transform_3(%arg0: i32) -> (i32, i32) {
    %c0_i32 = arith.constant 0 : i32
    %c0_i32_0 = arith.constant 0 : i32
    %c0_i32_1 = arith.constant 0 : i32
    return %c0_i32, %c0_i32_0 : i32, i32
  }
}

</mosaic_0001>

<bundles_post_ra>
// kernel: attention_msa_visual_forward.1
= control target key start
LH: loop header
LB: loop body
LE: loop exit
PB: predicated region body
PF: predicated region fallthrough
CT: control target
= control target key end

     0   :  { %9 = vsyncpa [#allocation3], 0  ;;  %s3315_s0 = inlined_call_operand.vmem [shape: f32[2,16,64], index: 0, kind: input, shape index: {}]   ;;  %s3316_s1 = inlined_call_operand.vmem [shape: f32[64,64], index: 1, kind: input, shape index: {}]   ;;  %s3317_s2 = inlined_call_operand.hbm [shape: f32[2,16,128], index: 2, kind: output, shape index: {0}]   ;;  %s3318_s3 = inlined_call_operand.hbm [shape: f32[16,16], index: 3, kind: output, shape index: {1}]  }
   0x1   :  { %11 = vsyncpa [#allocation3 + $0x1], 0 }
   0x2   :  { %12 = vsyncpa [#allocation5], 0  ;;  %s2785_s12 = smov 0   ;;  %s2787_s13 = smov 0  }
   0x3   :  { %s2789_s14 = smov 0   ;;  %s2791_s15 = smov 0  }
   0x4 LB: > { %s2806_s16 = sadd.s32 4294967295, %s2744_s15   ;;  %s2213_s17 = sadd.s32 4294967294, %s2744_s15   ;;  %s2744_s15 = sphi %s2791_s15, %s3324_s15   ;;  %s2740_s14 = sphi %s2789_s14, %s3323_s14   ;;  %s2736_s13 = sphi %s2787_s13, %s3322_s13   ;;  %s2732_s12 = sphi %s2785_s12, %s3321_s12  }
   0x5   : > { %s2810_s18 = sadd.s32 1, %s2744_s15   ;;  %s72_s19 = sadd.s32 1, %s2740_s14 }
   0x6   : > { %s69_s20 = ssub.s32 %s2744_s15, %s2810_s18  ;;  %p82_p0 = scmp.ne.s32.totalorder %s2740_s14, %s2736_s13 }
   0x7   : > { %p70_p1 = scmp.eq.s32.totalorder %s69_s20, 0  ;;  %p83_p2 = scmp.eq.s32.totalorder %s2806_s16, 1 }
   0x8   : > { %p88_p3 = scmp.ne.s32.totalorder %s2736_s13, %s2732_s12  ;;  %p89_p4 = scmp.eq.s32.totalorder %s2213_s17, 1 }
   0x9   : > { %s2821_s21 = scalar_select %p70_p1, %s2740_s14, %s72_s19  }
   0xa   : > { %p2825_p5 = por %p83_p2, %p82_p0  ;;  %p2829_p6 = por %p89_p4, %p88_p3 }
   0xb   : > { %p2216_p7 = scmp.ge.s32.totalorder %s2744_s15, 1  ;;  %p139_p8 = scmp.lt.s32.totalorder %s2744_s15, 3 }
   0xd   : > { %p140_p9 = pnand %p2216_p7, %p139_p8 }
   0xe   : > { %p163_p10 = scmp.lt.s32.totalorder (!%p140_p9), %s2806_s16, 1  ;;  %s2746_s27 = smov (!%p140_p9), 120  }
   0xf   : > { %143 = sbr.rel (%p140_p9) target bundleno = 5365 (0x14f5), region = 28  ;;  %s2747_s28 = smov (!%p140_p9), 112  }
  0x10   : > { %s2748_s29 = smov (!%p140_p9), 104   ;;  %s2750_s4 = smov (!%p140_p9), 88  }
  0x11   : > { %s2751_s5 = smov (!%p140_p9), 80   ;;  %s2753_s7 = smov (!%p140_p9), 8  }
  0x12   : > { %s2754_s8 = smov (!%p140_p9), 16   ;;  %s2756_s10 = smov (!%p140_p9), 32  }
  0x13   : > { %s2757_s11 = smov (!%p140_p9), 40   ;;  %s2758_s17 = smov (!%p140_p9), 48  }
  0x14   : > { %v177_v0 = vld [vmem:[%s3316_s1 + $0x38] sm:$0xff]  ;;  %v176_v1 = vld [vmem:[%s3316_s1 + $0x30] sm:$0xff]  ;;  %v175_v2 = vld [vmem:[%s3316_s1 + $0x28] sm:$0xff]  ;;  %s164_s30 = scalar_select %p163_p10, %s2806_s16, 1  ;;  %vm178_vm0 = vcmask 523264   ;;  %vm262_vm1 = vcmask 64512  }
  0x15   : > { %2354 = vmatprep.subr.mxu0 %v177_v0  ;;  %v174_v3 = vld [vmem:[%s3316_s1 + $0x20] sm:$0xff]  ;;  %v173_v4 = vld [vmem:[%s3316_s1 + $0x18] sm:$0xff]  ;;  %v172_v6 = vld [vmem:[%s3316_s1 + $0x10] sm:$0xff]  ;;  %vm356_vm2 = vcmask 130048   ;;  %s2759_s19 = smov 56   ;;  %s2760_s20 = smov 64  }
  0x16   : > { %2355 = vmatpush3.msra.mxu0 %v177_v0  ;;  %s2278_s6 = sshll.u32 %s164_s30, 4  ;;  %v171_v7 = vld [vmem:[%s3316_s1 + $0x8] sm:$0xff]  ;;  %v170_v8 = vld [vmem:[%s3316_s1] sm:$0xff]  ;;  %s2749_s30 = smov 96   ;;  %vm2040_vm3 = vcmask 195584   ;;  %vm2043_vm4 = vcmask 261120  }
  0x17   : > { %2356 = vmatprep.subr.mxu0 %v176_v1  ;;  %s167_s9 = scalar_lea.vmem %s3315_s0, %s2278_s6  ;;  %s2752_s6 = smov 72   ;;  %vm2046_vm5 = vcmask 326656   ;;  %vm2049_vm6 = vcmask 392192   ;;  %vm2052_vm7 = vcmask 457728  }
  0x18   : > { %2357 = vmatpush3.msra.mxu0 %v176_v1  ;;  %v168_v5 = vld [vmem:[%s167_s9] sm:$0xff]  ;;  %v169_v9 = vld [vmem:[%s167_s9 + $0x8] sm:$0xff]  ;;  %s2755_s9 = smov 24   ;;  %s158_s24 = sand.u32 1, %s2736_s13  }
  0x19   : > { %2358 = vmatprep.subr.mxu0 %v175_v2  ;;  %2370 = vmatprep.mubr.msk.f32.mxu0 %vm178_vm0, %v168_v5  ;;  %s2217_s25 = sshll.u32 %s158_s24, 4  ;;  %p2270_p11 = scmp.ne.s32.totalorder %s2806_s16, 0 }
  0x1a   : > { %2359 = vmatpush3.msra.mxu0 %v175_v2  ;;  %s3235_s26 = scalar_lea.vmem [#allocation2], %s2217_s25 }
  0x1b   : > { %2360 = vmatprep.subr.mxu0 %v174_v3 }
  0x1c   : > { %2361 = vmatpush3.msra.mxu0 %v174_v3 }
  0x1d   : > { %2362 = vmatprep.subr.mxu0 %v173_v4 }
  0x1e   : > { %2363 = vmatpush3.msra.mxu0 %v173_v4 }
  0x1f   : > { %2364 = vmatprep.subr.mxu0 %v172_v6 }
  0x20   : > { %2365 = vmatpush3.msra.mxu0 %v172_v6 }
  0x21   : > { %2366 = vmatprep.subr.mxu0 %v171_v7 }
  0x22   : > { %2367 = vmatpush3.msra.mxu0 %v171_v7 }
  0x23   : > { %2368 = vmatprep.subr.mxu0 %v170_v8 }
  0x24   : > { %2369 = vmatpush3.msra.mxu0 %v170_v8 }
  0x25   : > { %2371 = vmatmul.mubr.msk.f32.vlgmr.msra.gmra.mxu0 %vm178_vm0, %v169_v9 }
  0xe5   : > { %v2866_v10 = vpop.f32.mrf.mxu0 }
  0xe6   : > { %v2870_v11 = vmul.f32 %v2866_v10, %v2866_v10 }
  0xe7   : > { %v2872_v12 = vpop.f32.mrf.mxu0 }
  0xe8   : > { %468 = vrot.lane.b32.xlu1 %v2870_v11, %s2746_s27  ;;  %v266_v13 = vsel %vm262_vm1, %v2870_v11, 0.0  ;;  %v2880_v14 = vmul.f32 %v2872_v12, %v2872_v12 }
  0xe9   : > { %267 = vadd.xlane.f32.xlu0 %v266_v13 }
  0xea   : > { %v263_v15 = vsel %vm262_vm1, %v2880_v14, 0.0 }
  0xec   : > { %466 = vrot.lane.b32.xlu1 %v2880_v14, %s2746_s27 }
  0xed   : > { %264 = vadd.xlane.f32.xlu0 %v263_v15 }
 0x15a   : > { %v469_v27 = vpop.permute.xlu1 %468 }
 0x15b   : > { %v475_v29 = vsel %vm262_vm1, %v469_v27, 0.0 }
 0x15e   : > { %v467_v30 = vpop.permute.xlu1 %466 }
 0x15f   : > { %v472_v31 = vsel %vm262_vm1, %v467_v30, 0.0 }
 0x172   : > { %v268_v16 = vpop.xlane.xlu0 %267 }
 0x173   : > { %2548 = vrsqrt.f32 %v268_v16 }
 0x176   : > { %v265_v17 = vpop.xlane.xlu0 %264 }
 0x177   : > { %2550 = vrsqrt.f32 %v265_v17 }
 0x180   : > { %v2549_v18 = vpop.eup %2548 }
 0x181   : > { %v272_v19 = vmul.f32 %v2549_v18, %v2866_v10 }
 0x183   : > { %2373 = vmatprep.subr.msk.mxu1 %vm262_vm1, %v272_v19 }
 0x184   : > { %v2551_v20 = vpop.eup %2550  ;;  %2374 = vmatpush3.xpose.msk.msra.mxu1 %vm262_vm1, %v272_v19 }
 0x185   : > { %v271_v21 = vmul.f32 %v2551_v20, %v2872_v12 }
 0x187   : > { %2375 = vmatprep.subr.msk.mxu1 %vm262_vm1, %v271_v21  ;;  %2377 = vmatprep.mubr.msk.f32.mxu1 %vm262_vm1, %v271_v21 }
 0x188   : > { %2376 = vmatpush3.xpose.msk.msra.mxu1 %vm262_vm1, %v271_v21 }
 0x189   : > { %2380 = vmatprep.subr.mxu1 %v2866_v10 }
 0x18b   : > { %2378 = vmatmul.mubr.msk.f32.vlgmr.msra.gmra.mxu1 %vm262_vm1, %v272_v19 }
 0x18c   : > { %2381 = vmatpush3.msra.mxu1 %v2866_v10 }
 0x18d   : > { %2382 = vmatprep.subr.mxu1 %v2872_v12 }
 0x18e   : > { %2383 = vmatpush3.msra.mxu1 %v2872_v12 }
 0x24b   : > { %v2898_v22 = vpop.f32.mrf.mxu1 }
 0x24c   : > { %v355_v23 = vmul.f32 25.0, %v2898_v22 }
 0x24d   : > { %v2901_v24 = vpop.f32.mrf.mxu1 }
 0x24e   : > { %v354_v25 = vmul.f32 25.0, %v2901_v24  ;;  %v360_v26 = vsel %vm356_vm2, %v355_v23, -inf }
 0x24f   : > { %361 = vmax.xlane.f32.xlu1 %v360_v26 }
 0x250   : > { %v357_v28 = vsel %vm356_vm2, %v354_v25, -inf }
 0x251   : > { %358 = vmax.xlane.f32.xlu0 %v357_v28 }
 0x255   : > { %476 = vadd.xlane.f32.xlu0 %v475_v29 }
 0x259   : > { %473 = vadd.xlane.f32.xlu0 %v472_v31 }
 0x2d8   : > { %v362_v32 = vpop.xlane.xlu1 %361 }
 0x2d9   : > { %v364_v33 = vsub.f32 %v355_v23, %v362_v32 }
 0x2da   : > { %v359_v34 = vpop.xlane.xlu0 %358 }
 0x2db   : > { %v367_v35 = vmul.f32 1.442695, %v364_v33  ;;  %v363_v36 = vsub.f32 %v354_v25, %v359_v34 }
 0x2dd   : > { %2552 = vpow2.f32 %v367_v35  ;;  %v365_v37 = vmul.f32 1.442695, %v363_v36 }
 0x2de   : > { %v477_v38 = vpop.xlane.xlu0 %476 }
 0x2df   : > { %2554 = vpow2.f32 %v365_v37 }
 0x2e2   : > { %v474_v39 = vpop.xlane.xlu0 %473 }
 0x2e3   : > { %2556 = vrsqrt.f32 %v474_v39 }
 0x2e4   : > { %2558 = vrsqrt.f32 %v477_v38 }
 0x2ea   : > { %v2553_v40 = vpop.eup %2552 }
 0x2eb   : > { %v372_v41 = vsel %vm356_vm2, %v2553_v40, 0.0 }
 0x2ec   : > { %v2555_v42 = vpop.eup %2554  ;;  %373 = vadd.xlane.f32.xlu0 %v372_v41 }
 0x2ed   : > { %v369_v43 = vsel %vm356_vm2, %v2555_v42, 0.0 }
 0x2f0   : > { %v2557_v44 = vpop.eup %2556  ;;  %370 = vadd.xlane.f32.xlu0 %v369_v43 }
 0x2f1   : > { %v480_v45 = vmul.f32 %v2557_v44, %v2872_v12  ;;  %v2559_v46 = vpop.eup %2558 }
 0x2f2   : > { %v481_v47 = vmul.f32 %v2559_v46, %v2866_v10 }
 0x2f3   : > { %484 = vrot.lane.b32.xlu1 %v480_v45, %s2746_s27 }
 0x306   : > { %486 = vrot.lane.b32.xlu0 %v481_v47, %s2746_s27 }
 0x30a   : > { %686 = vrot.lane.b32.xlu0 %v2870_v11, %s2747_s28 }
 0x30e   : > { %684 = vrot.lane.b32.xlu0 %v2880_v14, %s2747_s28 }
 0x365   : > { %v485_v55 = vpop.permute.xlu1 %484 }
 0x375   : > { %v374_v48 = vpop.xlane.xlu0 %373 }
 0x376   : > { %2560 = vrcp.f32 %v374_v48 }
 0x379   : > { %v371_v49 = vpop.xlane.xlu0 %370 }
 0x37a   : > { %2562 = vrcp.f32 %v371_v49 }
 0x37d   : > { %v487_v50 = vpop.permute.xlu0 %486 }
 0x37e   : > { %2387 = vmatprep.subr.msk.mxu1 %vm262_vm1, %v487_v50 }
 0x381   : > { %v687_v63 = vpop.permute.xlu0 %686 }
 0x382   : > { %v693_v1 = vsel %vm262_vm1, %v687_v63, 0.0 }
 0x383   : > { %v2561_v51 = vpop.eup %2560 }
 0x384   : > { %v2921_v54 = vmul.f32 %v2561_v51, %v2553_v40 }
 0x385   : > { %v685_v2 = vpop.permute.xlu0 %684 }
 0x386   : > { %v690_v3 = vsel %vm262_vm1, %v685_v2, 0.0 }
 0x387   : > { %v2563_v52 = vpop.eup %2562 }
 0x388   : > { %v2919_v53 = vmul.f32 %v2563_v52, %v2555_v42 }
 0x38a   : > { %2384 = vmatprep.mubr.msk.f32.mxu1 %vm356_vm2, %v2919_v53 }
 0x38b   : > { %2385 = vmatmul.mubr.msk.f32.vlgmr.msra.gmra.mxu1 %vm356_vm2, %v2921_v54 }
 0x38c   : > { %2388 = vmatpush3.xpose.msk.msra.mxu1 %vm262_vm1, %v487_v50  ;;  %2391 = vmatprep.mubr.msk.f32.mxu1 %vm262_vm1, %v485_v55 }
 0x38d   : > { %2389 = vmatprep.subr.msk.mxu1 %vm262_vm1, %v485_v55 }
 0x390   : > { %2390 = vmatpush3.xpose.msk.msra.mxu1 %vm262_vm1, %v485_v55 }
 0x393   : > { %2392 = vmatmul.mubr.msk.f32.vlgmr.msra.gmra.mxu1 %vm262_vm1, %v487_v50 }
 0x44b   : > { %v2932_v56 = vpop.f32.mrf.mxu1 }
 0x44d   : > { %v2934_v57 = vpop.f32.mrf.mxu1 }
 0x453   : > { %v2936_v58 = vpop.f32.mrf.mxu1 }
 0x454   : > { %v568_v59 = vmul.f32 25.0, %v2936_v58  ;;  %v681_v38 = vadd.f32 %v2936_v58, %v2898_v22 }
 0x455   : > { %v2939_v60 = vpop.f32.mrf.mxu1 }
 0x456   : > { %v567_v61 = vmul.f32 25.0, %v2939_v60  ;;  %v572_v62 = vsel %vm356_vm2, %v568_v59, -inf }
 0x457   : > { %573 = vmax.xlane.f32.xlu1 %v572_v62 }
 0x458   : > { %v569_v0 = vsel %vm356_vm2, %v567_v61, -inf }
 0x459   : > { %570 = vmax.xlane.f32.xlu0 %v569_v0 }
 0x45d   : > { %694 = vadd.xlane.f32.xlu0 %v693_v1 }
 0x461   : > { %691 = vadd.xlane.f32.xlu0 %v690_v3 }
 0x4e0   : > { %v574_v4 = vpop.xlane.xlu1 %573 }
 0x4e1   : > { %v576_v5 = vsub.f32 %v568_v59, %v574_v4 }
 0x4e2   : > { %v571_v6 = vpop.xlane.xlu0 %570 }
 0x4e3   : > { %v579_v7 = vmul.f32 1.442695, %v576_v5  ;;  %v575_v8 = vsub.f32 %v567_v61, %v571_v6 }
 0x4e5   : > { %2564 = vpow2.f32 %v579_v7  ;;  %v577_v9 = vmul.f32 1.442695, %v575_v8 }
 0x4e6   : > { %v695_v15 = vpop.xlane.xlu0 %694 }
 0x4e7   : > { %2566 = vpow2.f32 %v577_v9 }
 0x4e8   : > { %2568 = vrsqrt.f32 %v695_v15 }
 0x4ea   : > { %v692_v19 = vpop.xlane.xlu0 %691 }
 0x4eb   : > { %2570 = vrsqrt.f32 %v692_v19 }
 0x4f2   : > { %v2565_v13 = vpop.eup %2564 }
 0x4f3   : > { %v584_v16 = vsel %vm356_vm2, %v2565_v13, 0.0 }
 0x4f4   : > { %v2567_v17 = vpop.eup %2566  ;;  %585 = vadd.xlane.f32.xlu1 %v584_v16 }
 0x4f5   : > { %v581_v18 = vsel %vm356_vm2, %v2567_v17, 0.0  ;;  %v2569_v20 = vpop.eup %2568 }
 0x4f6   : > { %582 = vadd.xlane.f32.xlu0 %v581_v18  ;;  %v699_v21 = vmul.f32 %v2569_v20, %v2866_v10 }
 0x4f8   : > { %v2571_v23 = vpop.eup %2570 }
 0x4f9   : > { %v698_v25 = vmul.f32 %v2571_v23, %v2872_v12 }
 0x505   : > { %593 = vrot.lane.b32.xlu1 %v2872_v12, %s2746_s27 }
 0x509   : > { %704 = vrot.lane.b32.xlu1 %v699_v21, %s2747_s28 }
 0x50c   : > { %595 = vrot.lane.b32.xlu0 %v2866_v10, %s2746_s27 }
 0x50d   : > { %702 = vrot.lane.b32.xlu1 %v698_v25, %s2747_s28 }
 0x510   : > { %902 = vrot.lane.b32.xlu0 %v2870_v11, %s2748_s29 }
 0x511   : > { %900 = vrot.lane.b32.xlu1 %v2880_v14, %s2748_s29 }
 0x57d   : > { %v586_v26 = vpop.xlane.xlu1 %585 }
 0x57e   : > { %2572 = vrcp.f32 %v586_v26 }
 0x57f   : > { %v583_v27 = vpop.xlane.xlu0 %582 }
 0x580   : > { %2574 = vrcp.f32 %v583_v27 }
 0x581   : > { %v594_v28 = vpop.permute.xlu1 %593 }
 0x583   : > { %v596_v29 = vpop.permute.xlu0 %595 }
 0x584   : > { %2394 = vmatprep.subr.mxu0 %v596_v29 }
 0x585   : > { %2395 = vmatpush3.msra.mxu0 %v596_v29  ;;  %v705_v30 = vpop.permute.xlu1 %704 }
 0x586   : > { %2396 = vmatprep.subr.mxu0 %v594_v28 }
 0x587   : > { %2397 = vmatpush3.msra.mxu0 %v594_v28  ;;  %v903_v46 = vpop.permute.xlu0 %902 }
 0x588   : > { %2401 = vmatprep.subr.msk.mxu0 %vm262_vm1, %v705_v30  ;;  %v909_v47 = vsel %vm262_vm1, %v903_v46, 0.0 }
 0x589   : > { %v703_v35 = vpop.permute.xlu1 %702 }
 0x58b   : > { %v2573_v31 = vpop.eup %2572 }
 0x58c   : > { %v2963_v34 = vmul.f32 %v2573_v31, %v2565_v13 }
 0x58d   : > { %v2575_v32 = vpop.eup %2574  ;;  %v901_v48 = vpop.permute.xlu1 %900 }
 0x58e   : > { %v2961_v33 = vmul.f32 %v2575_v32, %v2567_v17  ;;  %v906_v22 = vsel %vm262_vm1, %v901_v48, 0.0  ;;  %v683_v16 = vadd.f32 %v2963_v34, %v2921_v54 }
 0x590   : > { %2398 = vmatprep.mubr.msk.f32.mxu0 %vm356_vm2, %v2961_v33  ;;  %v682_v19 = vadd.f32 %v2961_v33, %v2919_v53 }
 0x591   : > { %2399 = vmatmul.mubr.msk.f32.vlgmr.msra.gmra.mxu0 %vm356_vm2, %v2963_v34 }
 0x592   : > { %2402 = vmatpush3.xpose.msk.msra.mxu0 %vm262_vm1, %v705_v30  ;;  %2405 = vmatprep.mubr.msk.f32.mxu0 %vm262_vm1, %v703_v35 }
 0x593   : > { %2403 = vmatprep.subr.msk.mxu0 %vm262_vm1, %v703_v35 }
 0x596   : > { %2404 = vmatpush3.xpose.msk.msra.mxu0 %vm262_vm1, %v703_v35 }
 0x599   : > { %2406 = vmatmul.mubr.msk.f32.vlgmr.msra.gmra.mxu0 %vm262_vm1, %v705_v30 }
 0x651   : > { %v2974_v36 = vpop.f32.mrf.mxu0 }
 0x653   : > { %v2976_v37 = vpop.f32.mrf.mxu0 }
 0x659   : > { %v2407_v39 = vpop.f32.mrf.mxu0 }
 0x65a   : > { %v786_v40 = vmul.f32 25.0, %v2407_v39  ;;  %v2980_v41 = vadd.f32 %v2407_v39, %v681_v38 }
 0x65b   : > { %v2982_v42 = vpop.f32.mrf.mxu0 }
 0x65c   : > { %v785_v43 = vmul.f32 25.0, %v2982_v42  ;;  %v790_v44 = vsel %vm356_vm2, %v786_v40, -inf }
 0x65d   : > { %791 = vmax.xlane.f32.xlu1 %v790_v44 }
 0x65e   : > { %v787_v45 = vsel %vm356_vm2, %v785_v43, -inf }
 0x65f   : > { %788 = vmax.xlane.f32.xlu0 %v787_v45 }
 0x663   : > { %910 = vadd.xlane.f32.xlu0 %v909_v47 }
 0x667   : > { %907 = vadd.xlane.f32.xlu0 %v906_v22 }
 0x6e6   : > { %v792_v49 = vpop.xlane.xlu1 %791 }
 0x6e7   : > { %v794_v50 = vsub.f32 %v786_v40, %v792_v49 }
 0x6e8   : > { %v789_v51 = vpop.xlane.xlu0 %788 }
 0x6e9   : > { %v797_v52 = vmul.f32 1.442695, %v794_v50  ;;  %v793_v55 = vsub.f32 %v785_v43, %v789_v51 }
 0x6eb   : > { %2576 = vpow2.f32 %v797_v52  ;;  %v795_v58 = vmul.f32 1.442695, %v793_v55 }
 0x6ec   : > { %v911_v61 = vpop.xlane.xlu0 %910 }
 0x6ed   : > { %2578 = vpow2.f32 %v795_v58 }
 0x6ee   : > { %2580 = vrsqrt.f32 %v911_v61 }
 0x6f0   : > { %v908_v1 = vpop.xlane.xlu0 %907 }
 0x6f1   : > { %2582 = vrsqrt.f32 %v908_v1 }
 0x6f8   : > { %v2577_v59 = vpop.eup %2576 }
 0x6f9   : > { %v802_v62 = vsel %vm356_vm2, %v2577_v59, 0.0 }
 0x6fa   : > { %v2579_v63 = vpop.eup %2578  ;;  %803 = vadd.xlane.f32.xlu1 %v802_v62 }
 0x6fb   : > { %v799_v0 = vsel %vm356_vm2, %v2579_v63, 0.0  ;;  %v2581_v2 = vpop.eup %2580 }
 0x6fc   : > { %800 = vadd.xlane.f32.xlu0 %v799_v0  ;;  %v915_v3 = vmul.f32 %v2581_v2, %v2866_v10 }
 0x6fe   : > { %v2583_v4 = vpop.eup %2582 }
 0x6ff   : > { %v914_v5 = vmul.f32 %v2583_v4, %v2872_v12 }
 0x70b   : > { %809 = vrot.lane.b32.xlu1 %v2872_v12, %s2747_s28 }
 0x70f   : > { %920 = vrot.lane.b32.xlu1 %v915_v3, %s2748_s29 }
 0x712   : > { %811 = vrot.lane.b32.xlu0 %v2866_v10, %s2747_s28 }
 0x713   : > { %918 = vrot.lane.b32.xlu1 %v914_v5, %s2748_s29 }
 0x716   : > { %1118 = vrot.lane.b32.xlu0 %v2870_v11, %s2749_s30 }
 0x717   : > { %1116 = vrot.lane.b32.xlu1 %v2880_v14, %s2749_s30 }
 0x783   : > { %v804_v6 = vpop.xlane.xlu1 %803 }
 0x784   : > { %2584 = vrcp.f32 %v804_v6 }
 0x785   : > { %v801_v7 = vpop.xlane.xlu0 %800 }
 0x786   : > { %2586 = vrcp.f32 %v801_v7 }
 0x787   : > { %v810_v8 = vpop.permute.xlu1 %809 }
 0x789   : > { %v812_v9 = vpop.permute.xlu0 %811 }
 0x78a   : > { %2408 = vmatprep.subr.mxu1 %v812_v9 }
 0x78b   : > { %2409 = vmatpush3.msra.mxu1 %v812_v9  ;;  %v921_v13 = vpop.permute.xlu1 %920 }
 0x78c   : > { %2410 = vmatprep.subr.mxu1 %v810_v8 }
 0x78d   : > { %2411 = vmatpush3.msra.mxu1 %v810_v8  ;;  %v1119_v33 = vpop.permute.xlu0 %1118 }
 0x78e   : > { %2415 = vmatprep.subr.msk.mxu1 %vm262_vm1, %v921_v13  ;;  %v1125_v34 = vsel %vm262_vm1, %v1119_v33, 0.0 }
 0x78f   : > { %v919_v25 = vpop.permute.xlu1 %918 }
 0x791   : > { %v2585_v15 = vpop.eup %2584 }
 0x792   : > { %v808_v17 = vmul.f32 %v2585_v15, %v2577_v59 }
 0x793   : > { %v2587_v18 = vpop.eup %2586  ;;  %v1117_v35 = vpop.permute.xlu1 %1116 }
 0x794   : > { %v806_v20 = vmul.f32 %v2587_v18, %v2579_v63  ;;  %v3008_v21 = vadd.f32 %v808_v17, %v683_v16  ;;  %v1122_v38 = vsel %vm262_vm1, %v1117_v35, 0.0 }
 0x796   : > { %2412 = vmatprep.mubr.msk.f32.mxu1 %vm356_vm2, %v806_v20  ;;  %v3011_v23 = vadd.f32 %v806_v20, %v682_v19 }
 0x797   : > { %2413 = vmatmul.mubr.msk.f32.vlgmr.msra.gmra.mxu1 %vm356_vm2, %v808_v17 }
 0x798   : > { %2416 = vmatpush3.xpose.msk.msra.mxu1 %vm262_vm1, %v921_v13  ;;  %2419 = vmatprep.mubr.msk.f32.mxu1 %vm262_vm1, %v919_v25 }
 0x799   : > { %2417 = vmatprep.subr.msk.mxu1 %vm262_vm1, %v919_v25 }
 0x79c   : > { %2418 = vmatpush3.xpose.msk.msra.mxu1 %vm262_vm1, %v919_v25 }
 0x79f   : > { %2420 = vmatmul.mubr.msk.f32.vlgmr.msra.gmra.mxu1 %vm262_vm1, %v921_v13 }
 0x857   : > { %v3019_v53 = vpop.f32.mrf.mxu1 }
 0x859   : > { %v3021_v54 = vpop.f32.mrf.mxu1 }
 0x85f   : > { %v2421_v26 = vpop.f32.mrf.mxu1 }
 0x860   : > { %v1002_v27 = vmul.f32 25.0, %v2421_v26  ;;  %v3024_v28 = vadd.f32 %v2421_v26, %v2980_v41 }
 0x861   : > { %v3026_v29 = vpop.f32.mrf.mxu1 }
 0x862   : > { %v1001_v30 = vmul.f32 25.0, %v3026_v29  ;;  %v1006_v31 = vsel %vm356_vm2, %v1002_v27, -inf }
 0x863   : > { %1007 = vmax.xlane.f32.xlu1 %v1006_v31 }
 0x864   : > { %v1003_v32 = vsel %vm356_vm2, %v1001_v30, -inf }
 0x865   : > { %1004 = vmax.xlane.f32.xlu0 %v1003_v32 }
 0x869   : > { %1126 = vadd.xlane.f32.xlu0 %v1125_v34 }
 0x86d   : > { %1123 = vadd.xlane.f32.xlu0 %v1122_v38 }
 0x8ec   : > { %v1008_v39 = vpop.xlane.xlu1 %1007 }
 0x8ed   : > { %v1010_v40 = vsub.f32 %v1002_v27, %v1008_v39 }
 0x8ee   : > { %v1005_v41 = vpop.xlane.xlu0 %1004 }
 0x8ef   : > { %v1013_v43 = vmul.f32 1.442695, %v1010_v40  ;;  %v1009_v44 = vsub.f32 %v1001_v30, %v1005_v41 }
 0x8f1   : > { %2588 = vpow2.f32 %v1013_v43  ;;  %v1011_v45 = vmul.f32 1.442695, %v1009_v44 }
 0x8f2   : > { %v1127_v47 = vpop.xlane.xlu0 %1126 }
 0x8f3   : > { %2590 = vpow2.f32 %v1011_v45 }
 0x8f4   : > { %2592 = vrsqrt.f32 %v1127_v47 }
 0x8f6   : > { %v1124_v50 = vpop.xlane.xlu0 %1123 }
 0x8f7   : > { %2594 = vrsqrt.f32 %v1124_v50 }
 0x8fe   : > { %v2589_v46 = vpop.eup %2588 }
 0x8ff   : > { %v1018_v48 = vsel %vm356_vm2, %v2589_v46, 0.0 }
 0x900   : > { %v2591_v22 = vpop.eup %2590  ;;  %1019 = vadd.xlane.f32.xlu1 %v1018_v48 }
 0x901   : > { %v1015_v49 = vsel %vm356_vm2, %v2591_v22, 0.0  ;;  %v2593_v51 = vpop.eup %2592 }
 0x902   : > { %1016 = vadd.xlane.f32.xlu0 %v1015_v49  ;;  %v1131_v52 = vmul.f32 %v2593_v51, %v2866_v10 }
 0x904   : > { %v2595_v55 = vpop.eup %2594 }
 0x905   : > { %v1130_v58 = vmul.f32 %v2595_v55, %v2872_v12 }
 0x911   : > { %1025 = vrot.lane.b32.xlu1 %v2872_v12, %s2748_s29 }
 0x915   : > { %1136 = vrot.lane.b32.xlu1 %v1131_v52, %s2749_s30 }
 0x918   : > { %1027 = vrot.lane.b32.xlu0 %v2866_v10, %s2748_s29 }
 0x919   : > { %1134 = vrot.lane.b32.xlu1 %v1130_v58, %s2749_s30 }
 0x91c   : > { %1334 = vrot.lane.b32.xlu0 %v2870_v11, %s2750_s4 }
 0x91d   : > { %1332 = vrot.lane.b32.xlu1 %v2880_v14, %s2750_s4 }
 0x989   : > { %v1020_v59 = vpop.xlane.xlu1 %1019 }
 0x98a   : > { %2596 = vrcp.f32 %v1020_v59 }
 0x98b   : > { %v1017_v61 = vpop.xlane.xlu0 %1016 }
 0x98c   : > { %2598 = vrcp.f32 %v1017_v61 }
 0x98d   : > { %v1026_v62 = vpop.permute.xlu1 %1025 }
 0x98f   : > { %v1028_v63 = vpop.permute.xlu0 %1027 }
 0x990   : > { %2422 = vmatprep.subr.mxu0 %v1028_v63 }
 0x991   : > { %2423 = vmatpush3.msra.mxu0 %v1028_v63  ;;  %v1137_v0 = vpop.permute.xlu1 %1136 }
 0x992   : > { %2424 = vmatprep.subr.mxu0 %v1026_v62 }
 0x993   : > { %2425 = vmatpush3.msra.mxu0 %v1026_v62 }
 0x994   : > { %2429 = vmatprep.subr.msk.mxu0 %vm262_vm1, %v1137_v0 }
 0x995   : > { %v1135_v7 = vpop.permute.xlu1 %1134 }
 0x997   : > { %v2597_v1 = vpop.eup %2596 }
 0x998   : > { %v1024_v2 = vmul.f32 %v2597_v1, %v2589_v46 }
 0x999   : > { %v2599_v3 = vpop.eup %2598  ;;  %v1333_v25 = vpop.permute.xlu1 %1332 }
 0x99a   : > { %v1022_v4 = vmul.f32 %v2599_v3, %v2591_v22  ;;  %v3049_v5 = vadd.f32 %v1024_v2, %v3008_v21  ;;  %v1335_v21 = vpop.permute.xlu0 %1334  ;;  %v1338_v26 = vsel %vm262_vm1, %v1333_v25, 0.0 }
 0x99c   : > { %2426 = vmatprep.mubr.msk.f32.mxu0 %vm356_vm2, %v1022_v4  ;;  %v3053_v6 = vadd.f32 %v1022_v4, %v3011_v23  ;;  %v1341_v23 = vsel %vm262_vm1, %v1335_v21, 0.0 }
 0x99d   : > { %2427 = vmatmul.mubr.msk.f32.vlgmr.msra.gmra.mxu0 %vm356_vm2, %v1024_v2 }
 0x99e   : > { %2430 = vmatpush3.xpose.msk.msra.mxu0 %vm262_vm1, %v1137_v0  ;;  %2433 = vmatprep.mubr.msk.f32.mxu0 %vm262_vm1, %v1135_v7 }
 0x99f   : > { %2431 = vmatprep.subr.msk.mxu0 %vm262_vm1, %v1135_v7 }
 0x9a2   : > { %2432 = vmatpush3.xpose.msk.msra.mxu0 %vm262_vm1, %v1135_v7 }
 0x9a5   : > { %2434 = vmatmul.mubr.msk.f32.vlgmr.msra.gmra.mxu0 %vm262_vm1, %v1137_v0 }
 0xa5d   : > { %v3061_v8 = vpop.f32.mrf.mxu0 }
 0xa5f   : > { %v3063_v9 = vpop.f32.mrf.mxu0 }
 0xa65   : > { %v2435_v13 = vpop.f32.mrf.mxu0 }
 0xa66   : > { %v1218_v15 = vmul.f32 25.0, %v2435_v13  ;;  %v3066_v16 = vadd.f32 %v2435_v13, %v3024_v28 }
 0xa67   : > { %v3068_v17 = vpop.f32.mrf.mxu0 }
 0xa68   : > { %v1217_v18 = vmul.f32 25.0, %v3068_v17  ;;  %v1222_v19 = vsel %vm356_vm2, %v1218_v15, -inf }
 0xa69   : > { %1223 = vmax.xlane.f32.xlu1 %v1222_v19 }
 0xa6a   : > { %v1219_v20 = vsel %vm356_vm2, %v1217_v18, -inf }
 0xa6b   : > { %1220 = vmax.xlane.f32.xlu0 %v1219_v20 }
 0xa6f   : > { %1342 = vadd.xlane.f32.xlu0 %v1341_v23 }
 0xa73   : > { %1339 = vadd.xlane.f32.xlu0 %v1338_v26 }
 0xaf2   : > { %v1224_v27 = vpop.xlane.xlu1 %1223 }
 0xaf3   : > { %v1226_v28 = vsub.f32 %v1218_v15, %v1224_v27 }
 0xaf4   : > { %v1221_v30 = vpop.xlane.xlu0 %1220 }
 0xaf5   : > { %v1229_v31 = vmul.f32 1.442695, %v1226_v28  ;;  %v1225_v32 = vsub.f32 %v1217_v18, %v1221_v30 }
 0xaf7   : > { %2600 = vpow2.f32 %v1229_v31  ;;  %v1227_v33 = vmul.f32 1.442695, %v1225_v32 }
 0xaf8   : > { %v1343_v35 = vpop.xlane.xlu0 %1342 }
 0xaf9   : > { %2602 = vpow2.f32 %v1227_v33 }
 0xafa   : > { %2604 = vrsqrt.f32 %v1343_v35 }
 0xafc   : > { %v1340_v41 = vpop.xlane.xlu0 %1339 }
 0xafd   : > { %2606 = vrsqrt.f32 %v1340_v41 }
 0xb04   : > { %v2601_v34 = vpop.eup %2600 }
 0xb05   : > { %v1234_v38 = vsel %vm356_vm2, %v2601_v34, 0.0 }
 0xb06   : > { %v2603_v39 = vpop.eup %2602  ;;  %1235 = vadd.xlane.f32.xlu1 %v1234_v38 }
 0xb07   : > { %v1231_v40 = vsel %vm356_vm2, %v2603_v39, 0.0  ;;  %v2605_v43 = vpop.eup %2604 }
 0xb08   : > { %1232 = vadd.xlane.f32.xlu0 %v1231_v40  ;;  %v1347_v44 = vmul.f32 %v2605_v43, %v2866_v10 }
 0xb0a   : > { %v2607_v45 = vpop.eup %2606 }
 0xb0b   : > { %v1346_v46 = vmul.f32 %v2607_v45, %v2872_v12 }
 0xb17   : > { %1241 = vrot.lane.b32.xlu1 %v2872_v12, %s2749_s30 }
 0xb1b   : > { %1352 = vrot.lane.b32.xlu1 %v1347_v44, %s2750_s4 }
 0xb1e   : > { %1243 = vrot.lane.b32.xlu0 %v2866_v10, %s2749_s30 }
 0xb1f   : > { %1350 = vrot.lane.b32.xlu1 %v1346_v46, %s2750_s4 }
 0xb22   : > { %1550 = vrot.lane.b32.xlu0 %v2870_v11, %s2751_s5 }
 0xb23   : > { %1548 = vrot.lane.b32.xlu1 %v2880_v14, %s2751_s5 }
 0xb8f   : > { %v1236_v47 = vpop.xlane.xlu1 %1235 }
 0xb90   : > { %2608 = vrcp.f32 %v1236_v47 }
 0xb91   : > { %v1233_v48 = vpop.xlane.xlu0 %1232 }
 0xb92   : > { %2610 = vrcp.f32 %v1233_v48 }
 0xb93   : > { %v1242_v22 = vpop.permute.xlu1 %1241 }
 0xb95   : > { %v1244_v49 = vpop.permute.xlu0 %1243 }
 0xb96   : > { %2436 = vmatprep.subr.mxu1 %v1244_v49 }
 0xb97   : > { %2437 = vmatpush3.msra.mxu1 %v1244_v49  ;;  %v1353_v50 = vpop.permute.xlu1 %1352 }
 0xb98   : > { %2438 = vmatprep.subr.mxu1 %v1242_v22 }
 0xb99   : > { %2439 = vmatpush3.msra.mxu1 %v1242_v22  ;;  %v1551_v13 = vpop.permute.xlu0 %1550 }
 0xb9a   : > { %2443 = vmatprep.subr.msk.mxu1 %vm262_vm1, %v1353_v50  ;;  %v1557_v15 = vsel %vm262_vm1, %v1551_v13, 0.0 }
 0xb9b   : > { %v1351_v62 = vpop.permute.xlu1 %1350 }
 0xb9d   : > { %v2609_v51 = vpop.eup %2608 }
 0xb9e   : > { %v1240_v52 = vmul.f32 %v2609_v51, %v2601_v34 }
 0xb9f   : > { %v2611_v55 = vpop.eup %2610  ;;  %v1549_v18 = vpop.permute.xlu1 %1548 }
 0xba0   : > { %v1238_v58 = vmul.f32 %v2611_v55, %v2603_v39  ;;  %v3091_v59 = vadd.f32 %v1240_v52, %v3049_v5  ;;  %v1554_v19 = vsel %vm262_vm1, %v1549_v18, 0.0 }
 0xba2   : > { %2440 = vmatprep.mubr.msk.f32.mxu1 %vm356_vm2, %v1238_v58  ;;  %v3095_v61 = vadd.f32 %v1238_v58, %v3053_v6 }
 0xba3   : > { %2441 = vmatmul.mubr.msk.f32.vlgmr.msra.gmra.mxu1 %vm356_vm2, %v1240_v52 }
 0xba4   : > { %2444 = vmatpush3.xpose.msk.msra.mxu1 %vm262_vm1, %v1353_v50  ;;  %2447 = vmatprep.mubr.msk.f32.mxu1 %vm262_vm1, %v1351_v62 }
 0xba5   : > { %2445 = vmatprep.subr.msk.mxu1 %vm262_vm1, %v1351_v62 }
 0xba8   : > { %2446 = vmatpush3.xpose.msk.msra.mxu1 %vm262_vm1, %v1351_v62 }
 0xbab   : > { %2448 = vmatmul.mubr.msk.f32.vlgmr.msra.gmra.mxu1 %vm262_vm1, %v1353_v50 }
 0xc63   : > { %v3103_v63 = vpop.f32.mrf.mxu1 }
 0xc65   : > { %v3105_v0 = vpop.f32.mrf.mxu1 }
 0xc6b   : > { %v2449_v1 = vpop.f32.mrf.mxu1 }
 0xc6c   : > { %v1434_v2 = vmul.f32 25.0, %v2449_v1  ;;  %v3108_v3 = vadd.f32 %v2449_v1, %v3066_v16 }
 0xc6d   : > { %v3110_v4 = vpop.f32.mrf.mxu1 }
 0xc6e   : > { %v1433_v5 = vmul.f32 25.0, %v3110_v4  ;;  %v1438_v6 = vsel %vm356_vm2, %v1434_v2, -inf }
 0xc6f   : > { %1439 = vmax.xlane.f32.xlu1 %v1438_v6 }
 0xc70   : > { %v1435_v7 = vsel %vm356_vm2, %v1433_v5, -inf }
 0xc71   : > { %1436 = vmax.xlane.f32.xlu0 %v1435_v7 }
 0xc75   : > { %1558 = vadd.xlane.f32.xlu0 %v1557_v15 }
 0xc79   : > { %1555 = vadd.xlane.f32.xlu0 %v1554_v19 }
 0xcf8   : > { %v1440_v16 = vpop.xlane.xlu1 %1439 }
 0xcf9   : > { %v1442_v20 = vsub.f32 %v1434_v2, %v1440_v16 }
 0xcfa   : > { %v1437_v21 = vpop.xlane.xlu0 %1436 }
 0xcfb   : > { %v1445_v23 = vmul.f32 1.442695, %v1442_v20  ;;  %v1441_v25 = vsub.f32 %v1433_v5, %v1437_v21 }
 0xcfd   : > { %2612 = vpow2.f32 %v1445_v23  ;;  %v1443_v26 = vmul.f32 1.442695, %v1441_v25 }
 0xcfe   : > { %v1559_v28 = vpop.xlane.xlu0 %1558 }
 0xcff   : > { %2614 = vpow2.f32 %v1443_v26 }
 0xd00   : > { %2616 = vrsqrt.f32 %v1559_v28 }
 0xd02   : > { %v1556_v33 = vpop.xlane.xlu0 %1555 }
 0xd03   : > { %2618 = vrsqrt.f32 %v1556_v33 }
 0xd0a   : > { %v2613_v27 = vpop.eup %2612 }
 0xd0b   : > { %v1450_v30 = vsel %vm356_vm2, %v2613_v27, 0.0 }
 0xd0c   : > { %v2615_v31 = vpop.eup %2614  ;;  %1451 = vadd.xlane.f32.xlu1 %v1450_v30 }
 0xd0d   : > { %v1447_v32 = vsel %vm356_vm2, %v2615_v31, 0.0  ;;  %v2617_v34 = vpop.eup %2616 }
 0xd0e   : > { %1448 = vadd.xlane.f32.xlu0 %v1447_v32  ;;  %v1563_v35 = vmul.f32 %v2617_v34, %v2866_v10 }
 0xd10   : > { %v2619_v38 = vpop.eup %2618 }
 0xd11   : > { %v1562_v39 = vmul.f32 %v2619_v38, %v2872_v12 }
 0xd1d   : > { %1457 = vrot.lane.b32.xlu1 %v2872_v12, %s2750_s4 }
 0xd21   : > { %1568 = vrot.lane.b32.xlu1 %v1563_v35, %s2751_s5 }
 0xd24   : > { %1459 = vrot.lane.b32.xlu0 %v2866_v10, %s2750_s4 }
 0xd25   : > { %1566 = vrot.lane.b32.xlu1 %v1562_v39, %s2751_s5 }
 0xd28   : > { %1766 = vrot.lane.b32.xlu0 %v2870_v11, %s2752_s6 }
 0xd29   : > { %1764 = vrot.lane.b32.xlu1 %v2880_v14, %s2752_s6 }
 0xd95   : > { %v1452_v40 = vpop.xlane.xlu1 %1451 }
 0xd96   : > { %2620 = vrcp.f32 %v1452_v40 }
 0xd97   : > { %v1449_v41 = vpop.xlane.xlu0 %1448 }
 0xd98   : > { %2622 = vrcp.f32 %v1449_v41 }
 0xd99   : > { %v1458_v43 = vpop.permute.xlu1 %1457 }
 0xd9b   : > { %v1460_v44 = vpop.permute.xlu0 %1459 }
 0xd9c   : > { %2450 = vmatprep.subr.mxu0 %v1460_v44 }
 0xd9d   : > { %2451 = vmatpush3.msra.mxu0 %v1460_v44  ;;  %v1569_v45 = vpop.permute.xlu1 %1568 }
 0xd9e   : > { %2452 = vmatprep.subr.mxu0 %v1458_v43 }
 0xd9f   : > { %2453 = vmatpush3.msra.mxu0 %v1458_v43  ;;  %v1767_v2 = vpop.permute.xlu0 %1766 }
 0xda0   : > { %2457 = vmatprep.subr.msk.mxu0 %vm262_vm1, %v1569_v45  ;;  %v1773_v5 = vsel %vm262_vm1, %v1767_v2, 0.0 }
 0xda1   : > { %v1567_v49 = vpop.permute.xlu1 %1566 }
 0xda3   : > { %v2621_v46 = vpop.eup %2620 }
 0xda4   : > { %v1456_v47 = vmul.f32 %v2621_v46, %v2613_v27 }
 0xda5   : > { %v2623_v48 = vpop.eup %2622  ;;  %v1765_v6 = vpop.permute.xlu1 %1764 }
 0xda6   : > { %v1454_v11 = vmul.f32 %v2623_v48, %v2615_v31  ;;  %v3133_v22 = vadd.f32 %v1456_v47, %v3091_v59  ;;  %v1770_v7 = vsel %vm262_vm1, %v1765_v6, 0.0  ;;  %v680_v48 = vadd.f32 %v2939_v60, %v2901_v24 }
 0xda8   : > { %2454 = vmatprep.mubr.msk.f32.mxu0 %vm356_vm2, %v1454_v11  ;;  %v3137_v14 = vadd.f32 %v1454_v11, %v3095_v61  ;;  %v896_v11 = vadd.f32 %v2982_v42, %v680_v48 }
 0xda9   : > { %2455 = vmatmul.mubr.msk.f32.vlgmr.msra.gmra.mxu0 %vm356_vm2, %v1456_v47 }
 0xdaa   : > { %2458 = vmatpush3.xpose.msk.msra.mxu0 %vm262_vm1, %v1569_v45  ;;  %2461 = vmatprep.mubr.msk.f32.mxu0 %vm262_vm1, %v1567_v49 }
 0xdab   : > { %2459 = vmatprep.subr.msk.mxu0 %vm262_vm1, %v1567_v49 }
 0xdae   : > { %2460 = vmatpush3.xpose.msk.msra.mxu0 %vm262_vm1, %v1567_v49 }
 0xdb1   : > { %2462 = vmatmul.mubr.msk.f32.vlgmr.msra.gmra.mxu0 %vm262_vm1, %v1569_v45 }
 0xe69   : > { %v3145_v50 = vpop.f32.mrf.mxu0 }
 0xe6b   : > { %v3147_v51 = vpop.f32.mrf.mxu0 }
 0xe71   : > { %v2463_v52 = vpop.f32.mrf.mxu0 }
 0xe72   : > { %v1650_v55 = vmul.f32 25.0, %v2463_v52  ;;  %v3150_v58 = vadd.f32 %v2463_v52, %v3108_v3 }
 0xe73   : > { %v3152_v59 = vpop.f32.mrf.mxu0 }
 0xe74   : > { %v1649_v61 = vmul.f32 25.0, %v3152_v59  ;;  %v1654_v62 = vsel %vm356_vm2, %v1650_v55, -inf }
 0xe75   : > { %1655 = vmax.xlane.f32.xlu1 %v1654_v62 }
 0xe76   : > { %v1651_v1 = vsel %vm356_vm2, %v1649_v61, -inf }
 0xe77   : > { %1652 = vmax.xlane.f32.xlu0 %v1651_v1 }
 0xe7b   : > { %1774 = vadd.xlane.f32.xlu0 %v1773_v5 }
 0xe7f   : > { %1771 = vadd.xlane.f32.xlu0 %v1770_v7 }
 0xefe   : > { %v1656_v3 = vpop.xlane.xlu1 %1655 }
 0xeff   : > { %v1658_v13 = vsub.f32 %v1650_v55, %v1656_v3 }
 0xf00   : > { %v1653_v15 = vpop.xlane.xlu0 %1652 }
 0xf01   : > { %v1661_v18 = vmul.f32 1.442695, %v1658_v13  ;;  %v1657_v19 = vsub.f32 %v1649_v61, %v1653_v15 }
 0xf03   : > { %2624 = vpow2.f32 %v1661_v18  ;;  %v1659_v16 = vmul.f32 1.442695, %v1657_v19 }
 0xf04   : > { %v1775_v21 = vpop.xlane.xlu0 %1774 }
 0xf05   : > { %2626 = vpow2.f32 %v1659_v16 }
 0xf06   : > { %2628 = vrsqrt.f32 %v1775_v21 }
 0xf08   : > { %v1772_v27 = vpop.xlane.xlu0 %1771 }
 0xf09   : > { %2630 = vrsqrt.f32 %v1772_v27 }
 0xf10   : > { %v2625_v20 = vpop.eup %2624 }
 0xf11   : > { %v1666_v23 = vsel %vm356_vm2, %v2625_v20, 0.0 }
 0xf12   : > { %v2627_v25 = vpop.eup %2626  ;;  %1667 = vadd.xlane.f32.xlu1 %v1666_v23 }
 0xf13   : > { %v1663_v26 = vsel %vm356_vm2, %v2627_v25, 0.0  ;;  %v2629_v28 = vpop.eup %2628 }
 0xf14   : > { %1664 = vadd.xlane.f32.xlu0 %v1663_v26  ;;  %v1779_v30 = vmul.f32 %v2629_v28, %v2866_v10 }
 0xf16   : > { %v2631_v31 = vpop.eup %2630 }
 0xf17   : > { %v1778_v32 = vmul.f32 %v2631_v31, %v2872_v12 }
 0xf23   : > { %1673 = vrot.lane.b32.xlu1 %v2872_v12, %s2751_s5 }
 0xf27   : > { %1784 = vrot.lane.b32.xlu1 %v1779_v30, %s2752_s6 }
 0xf2a   : > { %1675 = vrot.lane.b32.xlu0 %v2866_v10, %s2751_s5 }
 0xf2b   : > { %1782 = vrot.lane.b32.xlu1 %v1778_v32, %s2752_s6 }
 0xf9b   : > { %v1668_v33 = vpop.xlane.xlu1 %1667 }
 0xf9c   : > { %2632 = vrcp.f32 %v1668_v33 }
 0xf9d   : > { %v1665_v34 = vpop.xlane.xlu0 %1664 }
 0xf9e   : > { %2634 = vrcp.f32 %v1665_v34 }
 0xf9f   : > { %v1674_v35 = vpop.permute.xlu1 %1673 }
 0xfa1   : > { %v1676_v38 = vpop.permute.xlu0 %1675 }
 0xfa2   : > { %2464 = vmatprep.subr.mxu1 %v1676_v38 }
 0xfa3   : > { %2465 = vmatpush3.msra.mxu1 %v1676_v38  ;;  %v1785_v39 = vpop.permute.xlu1 %1784 }
 0xfa4   : > { %2466 = vmatprep.subr.mxu1 %v1674_v35 }
 0xfa5   : > { %2467 = vmatpush3.msra.mxu1 %v1674_v35 }
 0xfa6   : > { %2471 = vmatprep.subr.msk.mxu1 %vm262_vm1, %v1785_v39 }
 0xfa7   : > { %v1783_v47 = vpop.permute.xlu1 %1782 }
 0xfa9   : > { %v2633_v40 = vpop.eup %2632 }
 0xfaa   : > { %v1672_v41 = vmul.f32 %v2633_v40, %v2625_v20 }
 0xfab   : > { %v2635_v43 = vpop.eup %2634 }
 0xfac   : > { %v1670_v44 = vmul.f32 %v2635_v43, %v2627_v25  ;;  %v3171_v45 = vadd.f32 %v1672_v41, %v3133_v22 }
 0xfae   : > { %2468 = vmatprep.mubr.msk.f32.mxu1 %vm356_vm2, %v1670_v44  ;;  %v3175_v46 = vadd.f32 %v1670_v44, %v3137_v14  ;;  %v1112_v14 = vadd.f32 %v3026_v29, %v896_v11 }
 0xfaf   : > { %2469 = vmatmul.mubr.msk.f32.vlgmr.msra.gmra.mxu1 %vm356_vm2, %v1672_v41 }
 0xfb0   : > { %2472 = vmatpush3.xpose.msk.msra.mxu1 %vm262_vm1, %v1785_v39  ;;  %2475 = vmatprep.mubr.msk.f32.mxu1 %vm262_vm1, %v1783_v47  ;;  %v1328_v49 = vadd.f32 %v3068_v17, %v1112_v14 }
 0xfb1   : > { %2473 = vmatprep.subr.msk.mxu1 %vm262_vm1, %v1783_v47 }
 0xfb2   : > { %v1544_v55 = vadd.f32 %v3110_v4, %v1328_v49 }
 0xfb4   : > { %2474 = vmatpush3.xpose.msk.msra.mxu1 %vm262_vm1, %v1783_v47  ;;  %v1760_v62 = vadd.f32 %v3152_v59, %v1544_v55 }
 0xfb7   : > { %2476 = vmatmul.mubr.msk.f32.vlgmr.msra.gmra.mxu1 %vm262_vm1, %v1785_v39 }
0x106f   : > { %v2470_v22 = vpop.f32.mrf.mxu1 }
0x1071   : > { %v1751_v52 = vpop.f32.mrf.mxu1 }
0x1077   : > { %v2477_v61 = vpop.f32.mrf.mxu1 }
0x1078   : > { %v1866_v1 = vmul.f32 25.0, %v2477_v61  ;;  %v3191_v2 = vadd.f32 %v2477_v61, %v3150_v58 }
0x1079   : > { %v1856_v5 = vpop.f32.mrf.mxu1 }
0x107a   : > { %v1865_v6 = vmul.f32 25.0, %v1856_v5  ;;  %v3193_v24 = vadd.f32 %v1856_v5, %v1760_v62  ;;  %v1870_v60 = vsel %vm356_vm2, %v1866_v1, -inf }
0x107b   : > { %1871 = vmax.xlane.f32.xlu1 %v1870_v60 }
0x107c   : > { %v1867_v42 = vsel %vm356_vm2, %v1865_v6, -inf }
0x107d   : > { %1868 = vmax.xlane.f32.xlu0 %v1867_v42 }
0x108c   : > { %1889 = vrot.lane.b32.xlu1 %v2872_v12, %s2752_s6 }
0x1090   : > { %1982 = vrot.lane.b32.xlu1 %v2976_v37, %s2753_s7 }
0x1094   : > { %1984 = vrot.lane.b32.xlu1 %v2974_v36, %s2753_s7 }
0x1098   : > { %1992 = vrot.lane.b32.xlu1 %v3019_v53, %s2754_s8 }
0x109c   : > { %2000 = vrot.lane.b32.xlu1 %v3061_v8, %s2755_s9 }
0x10a0   : > { %2008 = vrot.lane.b32.xlu1 %v3103_v63, %s2756_s10 }
0x10a4   : > { %2016 = vrot.lane.b32.xlu1 %v3145_v50, %s2757_s11 }
0x10a8   : > { %2024 = vrot.lane.b32.xlu1 %v2470_v22, %s2758_s17 }
0x1104   : > { %v1872_v29 = vpop.xlane.xlu1 %1871 }
0x1105   : > { %v1874_v17 = vsub.f32 %v1866_v1, %v1872_v29 }
0x1106   : > { %v1869_v37 = vpop.xlane.xlu0 %1868 }
0x1107   : > { %v1877_v4 = vmul.f32 1.442695, %v1874_v17  ;;  %v1873_v58 = vsub.f32 %v1865_v6, %v1869_v37 }
0x1108   : > { %v1890_v13 = vpop.permute.xlu1 %1889 }
0x1109   : > { %2636 = vpow2.f32 %v1877_v4  ;;  %v1875_v36 = vmul.f32 1.442695, %v1873_v58 }
0x110b   : > { %2638 = vpow2.f32 %v1875_v36 }
0x110c   : > { %v1983_v20 = vpop.permute.xlu1 %1982 }
0x110d   : > { %v2036_v35 = vsel %vm262_vm1, %v2934_v57, %v1983_v20 }
0x1110   : > { %v1985_v21 = vpop.permute.xlu1 %1984 }
0x1111   : > { %v2037_v34 = vsel %vm262_vm1, %v2932_v56, %v1985_v21 }
0x1114   : > { %v1993_v23 = vpop.permute.xlu1 %1992 }
0x1116   : > { %v2637_v53 = vpop.eup %2636 }
0x1117   : > { %v1882_v59 = vsel %vm356_vm2, %v2637_v53, 0.0 }
0x1118   : > { %v2639_v8 = vpop.eup %2638  ;;  %1883 = vadd.xlane.f32.xlu0 %v1882_v59  ;;  %v2001_v26 = vpop.permute.xlu1 %2000 }
0x1119   : > { %v1879_v63 = vsel %vm356_vm2, %v2639_v8, 0.0 }
0x111c   : > { %1880 = vadd.xlane.f32.xlu0 %v1879_v63  ;;  %v2009_v28 = vpop.permute.xlu1 %2008 }
0x1120   : > { %v2017_v31 = vpop.permute.xlu1 %2016 }
0x1124   : > { %v2025_v33 = vpop.permute.xlu1 %2024 }
0x1132   : > { %1891 = vrot.lane.b32.xlu0 %v2866_v10, %s2752_s6 }
0x1136   : > { %1990 = vrot.lane.b32.xlu0 %v3021_v54, %s2754_s8 }
0x113a   : > { %1998 = vrot.lane.b32.xlu0 %v3063_v9, %s2755_s9 }
0x113e   : > { %2006 = vrot.lane.b32.xlu0 %v3105_v0, %s2756_s10 }
0x1142   : > { %2014 = vrot.lane.b32.xlu0 %v3147_v51, %s2757_s11 }
0x1146   : > { %2022 = vrot.lane.b32.xlu0 %v1751_v52, %s2758_s17 }
0x11a1   : > { %v1884_v50 = vpop.xlane.xlu0 %1883 }
0x11a2   : > { %2640 = vrcp.f32 %v1884_v50 }
0x11a5   : > { %v1881_v7 = vpop.xlane.xlu0 %1880 }
0x11a6   : > { %2642 = vrcp.f32 %v1881_v7 }
0x11a9   : > { %v1892_v3 = vpop.permute.xlu0 %1891 }
0x11aa   : > { %2478 = vmatprep.subr.mxu0 %v1892_v3 }
0x11ab   : > { %2479 = vmatpush3.msra.mxu0 %v1892_v3 }
0x11ac   : > { %2480 = vmatprep.subr.mxu0 %v1890_v13 }
0x11ad   : > { %2481 = vmatpush3.msra.mxu0 %v1890_v13  ;;  %v1991_v25 = vpop.permute.xlu0 %1990 }
0x11ae   : > { %v2038_v41 = vsel %vm356_vm2, %v2036_v35, %v1991_v25 }
0x11af   : > { %v2641_v15 = vpop.eup %2640 }
0x11b0   : > { %v1888_v18 = vmul.f32 %v2641_v15, %v2637_v53 }
0x11b1   : > { %v1999_v27 = vpop.permute.xlu0 %1998 }
0x11b2   : > { %v1979_v54 = vadd.f32 %v1888_v18, %v3171_v45  ;;  %v2041_v43 = vsel %vm2040_vm3, %v2038_v41, %v1999_v27 }
0x11b3   : > { %v2643_v9 = vpop.eup %2642 }
0x11b4   : > { %v1886_v19 = vmul.f32 %v2643_v9, %v2639_v8 }
0x11b5   : > { %v2007_v30 = vpop.permute.xlu0 %2006 }
0x11b6   : > { %2482 = vmatprep.mubr.msk.f32.mxu0 %vm356_vm2, %v1886_v19  ;;  %v1978_v0 = vadd.f32 %v1886_v19, %v3175_v46  ;;  %v2044_v46 = vsel %vm2043_vm4, %v2041_v43, %v2007_v30 }
0x11b7   : > { %2483 = vmatmul.mubr.msk.f32.vlgmr.msra.gmra.mxu0 %vm356_vm2, %v1888_v18 }
0x11b9   : > { %v2015_v32 = vpop.permute.xlu0 %2014 }
0x11ba   : > { %v2047_v47 = vsel %vm2046_vm5, %v2044_v46, %v2015_v32 }
0x1277   : > { %v2484_v51 = vpop.f32.mrf.mxu0 }
0x1278   : > { %2032 = vrot.lane.b32.xlu1 %v2484_v51, %s2759_s19 }
0x1279   : > { %v1967_v16 = vpop.f32.mrf.mxu0 }
0x127a   : > { %2030 = vrot.lane.b32.xlu0 %v1967_v16, %s2759_s19 }
0x127c   : > { %2057 = vrot.lane.b32.xlu1 %v2866_v10, %s2760_s20  ;;  %v2023_v10 = vpop.permute.xlu0 %2022 }
0x127d   : > { %v2050_v11 = vsel %vm2049_vm6, %v2047_v47, %v2023_v10 }
0x127e   : > { %2055 = vrot.lane.b32.xlu0 %v2872_v12, %s2760_s20  ;;  %v2039_v12 = vsel %vm356_vm2, %v2037_v34, %v1993_v23 }
0x127f   : > { %v2042_v38 = vsel %vm2040_vm3, %v2039_v12, %v2001_v26 }
0x1280   : > { %v2045_v40 = vsel %vm2043_vm4, %v2042_v38, %v2009_v28 }
0x1281   : > { %v2048_v56 = vsel %vm2046_vm5, %v2045_v40, %v2017_v31 }
0x1282   : > { %v2051_v45 = vsel %vm2049_vm6, %v2048_v56, %v2025_v33 }
0x12ea   : > { %v2033_v39 = vpop.permute.xlu1 %2032 }
0x12eb   : > { %v2054_v57 = vsel %vm2052_vm7, %v2051_v45, %v2033_v39 }
0x12ec   : > { %v2031_v44 = vpop.permute.xlu0 %2030 }
0x12ed   : > { %v2053_v14 = vsel %vm2052_vm7, %v2050_v11, %v2031_v44 }
0x12ee   : > { %v2058_v48 = vpop.permute.xlu1 %2057  ;;  %2068 = sbr.rel (%p2270_p11) target bundleno = 5327 (0x14cf), region = 32 }
0x12ef   : > { %v2062_v22 = vsel %vm178_vm0, %v2054_v57, %v2058_v48 }
0x12f0   : > { %2064 = vst [vmem:[%s3235_s26 + $0x8] sm:$0xff] %v2062_v22  ;;  %v2056_v49 = vpop.permute.xlu0 %2055 }
0x12f1   : > { %v2061_v52 = vsel %vm178_vm0, %v2053_v14, %v2056_v49 }
0x12f2   : > { %2063 = vst [vmem:[%s3235_s26] sm:$0xff] %v2061_v52 }
0x12f3   : > { %v2075_v55 = vmul.f32 0.125, %v1978_v0  ;;  %v2076_v61 = vmul.f32 0.125, %v1979_v54  ;;  %v2069_v8 = vmul.f32 0.125, %v3193_v24  ;;  %v2070_v63 = vmul.f32 0.125, %v3191_v2 }
0x12f4   : > { %v2761_v7 = vmov 0.0  }
0x12f5   : > { %v2077_v62 = vsel %vm356_vm2, %v2075_v55, -inf  ;;  %v2080_v1 = vsel %vm356_vm2, %v2076_v61, -inf  ;;  %vm2071_vm8 = vcmp.gt.f32.partialorder %v2069_v8, 0.75  ;;  %vm2072_vm9 = vcmp.gt.f32.partialorder %v2070_v63, 0.75 }
0x12f6   : > { %2078 = vmax.xlane.f32.xlu0 %v2077_v62  ;;  %v2073_v3 = vsel %vm2071_vm8, 1.0, %v2761_v7  ;;  %v2074_v54 = vsel %vm2072_vm9, 1.0, %v2761_v7 }
0x12fa   : > { %2081 = vmax.xlane.f32.xlu0 %v2080_v1 }
0x137f   : > { %v2079_v5 = vpop.xlane.xlu0 %2078 }
0x1380   : > { %v2083_v6 = vsub.f32 %v2075_v55, %v2079_v5 }
0x1382   : > { %v2085_v60 = vmul.f32 1.442695, %v2083_v6 }
0x1383   : > { %v2082_v42 = vpop.xlane.xlu0 %2081 }
0x1384   : > { %2644 = vpow2.f32 %v2085_v60  ;;  %v2084_v29 = vsub.f32 %v2076_v61, %v2082_v42 }
0x1386   : > { %v2087_v17 = vmul.f32 1.442695, %v2084_v29 }
0x1388   : > { %2646 = vpow2.f32 %v2087_v17 }
0x1391   : > { %v2645_v37 = vpop.eup %2644 }
0x1392   : > { %v2089_v4 = vsel %vm356_vm2, %v2645_v37, 0.0 }
0x1393   : > { %2090 = vadd.xlane.f32.xlu1 %v2089_v4 }
0x1395   : > { %v2647_v58 = vpop.eup %2646 }
0x1396   : > { %v2092_v36 = vsel %vm356_vm2, %v2647_v58, 0.0 }
0x1397   : > { %2093 = vadd.xlane.f32.xlu1 %v2092_v36 }
0x141c   : > { %v2091_v53 = vpop.xlane.xlu1 %2090 }
0x141d   : > { %2648 = vrcp.f32 %v2091_v53 }
0x1420   : > { %v2094_v59 = vpop.xlane.xlu1 %2093 }
0x1421   : > { %2650 = vrcp.f32 %v2094_v59 }
0x142a   : > { %v2649_v50 = vpop.eup %2648 }
0x142b   : > { %v2096_v13 = vmul.f32 %v2649_v50, %v2645_v37 }
0x142d   : > { %v2099_v15 = vmul.f32 %v2096_v13, %v2073_v3 }
0x142e   : > { %v2651_v18 = vpop.eup %2650 }
0x142f   : > { %v2101_v9 = vsel %vm356_vm2, %v2099_v15, 0.0  ;;  %v2098_v19 = vmul.f32 %v2651_v18, %v2647_v58 }
0x1430   : > { %2102 = vadd.xlane.f32.xlu0 %v2101_v9 }
0x1431   : > { %v2100_v0 = vmul.f32 %v2098_v19, %v2074_v54 }
0x1433   : > { %v2104_v51 = vsel %vm356_vm2, %v2100_v0, 0.0 }
0x1434   : > { %2105 = vadd.xlane.f32.xlu1 %v2104_v51 }
0x14b9   : > { %v2103_v24 = vpop.xlane.xlu0 %2102 }
0x14ba   : > { %2652 = vrcp.f32 %v2103_v24 }
0x14bd   : > { %v2106_v16 = vpop.xlane.xlu1 %2105 }
0x14be   : > { %2654 = vrcp.f32 %v2106_v16 }
0x14c7   : > { %v2653_v2 = vpop.eup %2652 }
0x14c8   : > { %v2108_v20 = vmul.f32 %v2653_v2, %v2099_v15 }
0x14ca   : > { %2111 = vst.msk [vmem:[#allocation4] sm:$0xff] %vm356_vm2, %v2108_v20 }
0x14cb   : > { %v2655_v21 = vpop.eup %2654 }
0x14cc   : > { %v2110_v23 = vmul.f32 %v2655_v21, %v2100_v0 }
0x14ce   : > { %2112 = vst.msk [vmem:[#allocation4 + $0x8] sm:$0xff] %vm356_vm2, %v2110_v23 }
0x14cf PF: > { %s2279_s27 = sshll.u32 %s2806_s16, 8  ;;  %s2127_s4 = sshll.u32 %s3235_s26, 4  ;;  %s3258_s4 = int_to_ptr.vmem [resolvable:$true] %s2127_s4 }
0x14d0   : > { %s3255_s30 = scalar_lea.hbm %s3317_s2, %s2279_s27  ;;  %s3262_s5 = scalar_lea.sflag [#allocation3], %s158_s24 }
0x14d1   : > { %s2656_s6 = scalar_lea.vmem %s3258_s4, 256  ;;  %s2762_s8 = smov [#allocation2]  }
0x14d2   : > { %p2657_p12 = scmp.ne.s32.totalorder %s3258_s4, %s2656_s6  ;;  %s2660_s9 = sshll.u32 %s2762_s8, 4  ;;  %s2661_s9 = int_to_ptr.vmem [resolvable:$false] %s2660_s9 }
0x14d3   : > { %s2662_s10 = scalar_lea.vmem %s2661_s9, 512  ;;  %p2663_p1 = scmp.lt.s32.totalorder %s3258_s4, %s2661_s9 }
0x14d4   : > { %p2658_p13 = pnand %p2657_p12, %p2825_p5  ;;  %p2664_p3 = scmp.lt.s32.totalorder %s2662_s10, %s2656_s6 }
0x14d6   : > { %p2659_p0 = pneg %p2658_p13  ;;  %p2665_p4 = por %p2664_p3, %p2663_p1 }
0x14d8   : > { %p2666_p7 = pnand %p2665_p4, %p2659_p0 }
0x14da   : > { %2669 = shalt.err (!%p2666_p7)
}
0x14db   : > { %s2670_s11 = scalar_lea.hbm %s3255_s30, 256  ;;  %s2674_s20 = scalar_lea.hbm %s3317_s2, 512 }
0x14dc   : > { %p2671_p8 = scmp.ne.s32.totalorder %s3255_s30, %s2670_s11  ;;  %p2675_p11 = scmp.lt.s32.totalorder %s3255_s30, %s3317_s2 }
0x14dd   : > { %p2676_p12 = scmp.lt.s32.totalorder %s2674_s20, %s2670_s11 }
0x14de   : > { %p2672_p9 = pnand %p2671_p8, %p2825_p5 }
0x14df   : > { %p2677_p13 = por %p2676_p12, %p2675_p11 }
0x14e0   : > { %p2673_p10 = pneg %p2672_p9 }
0x14e2   : > { %p2678_p0 = pnand %p2677_p13, %p2673_p10 }
0x14e4   : > { %2681 = shalt.err (!%p2678_p0)
}
0x14e5   : > { %s2763_s26 = smov 128   ;;  %s2764_s27 = smov [#allocation4]  }
0x14e6   : > { %2485 = dma.vmem_to_hbm [thread:$0]  (%p2825_p5), %s3258_s4, 256, %s3255_s30, %s3262_s5, %s2763_s26, %s2763_s26, %s2753_s7  }
0x14e7   : > { %s2140_s28 = sshll.u32 %s2764_s27, 4  ;;  %s2141_s28 = int_to_ptr.vmem [resolvable:$true] %s2140_s28 }
0x14e8   : > { %s2682_s29 = scalar_lea.vmem %s2141_s28, 256  ;;  %p2689_p7 = scmp.lt.s32.totalorder %s2141_s28, %s2141_s28 }
0x14e9   : > { %p2683_p1 = scmp.ne.s32.totalorder %s2141_s28, %s2682_s29  ;;  %p2690_p8 = scmp.lt.s32.totalorder %s2682_s29, %s2682_s29 }
0x14eb   : > { %p2684_p3 = pnand %p2683_p1, %p83_p2  ;;  %p2691_p9 = por %p2690_p8, %p2689_p7 }
0x14ed   : > { %p2685_p4 = pneg %p2684_p3 }
0x14ef   : > { %p2692_p10 = pnand %p2691_p9, %p2685_p4 }
0x14f1   : > { %2695 = shalt.err (!%p2692_p10)
}
0x14f2   : > { %2487 = dma.vmem_to_hbm [thread:$0]  (%p83_p2), %s2141_s28, 256, %s3318_s3, [#allocation5], %s2763_s26, %s2763_s26, %s2753_s7  }
0x14f3   : > { %2723 = dma.done.wait (%p83_p2), [#allocation5], 256  }
0x14f4   : > { %2725 = vsyncadd (%p83_p2), [#allocation5], 4294967040 }
0x14f5 PF: > { %p2497_p5 = scmp.ge.s32.totalorder %s2744_s15, 2  ;;  %s2159_s30 = sand.u32 1, %s2732_s12  }
0x14f6   : > { %s2160_s4 = scalar_lea.sflag [#allocation3], %s2159_s30 }
0x14f7   : > { %p2492_p11 = pnand %p2497_p5, %p2829_p6 }
0x14f9   : > { %p2493_p12 = pneg %p2492_p11 }
0x14fb   : > { %2727 = dma.done.wait (%p2493_p12), %s2160_s4, 256  }
0x14fc   : > { %2729 = vsyncadd (%p2493_p12), %s2160_s4, 4294967040  ;;  %p15_p13 = scmp.ge.s32.totalorder %s2810_s18, 4   ;;  %s3321_s12 = smov %s2736_s13 }
0x14fd   : > { %s3322_s13 = smov %s2740_s14  ;;  %s3323_s14 = smov %s2821_s21 }
0x14fe   : > { %s3324_s15 = smov %s2810_s18  ;;  %17 = sbr.rel (!%p15_p13) target bundleno = 4 (0x4), region = 75 }
0x1503   :  { %2165 = vsyncpa [#allocation3], 1 }
0x1504   :  { %2167 = vsyncpa [#allocation3 + $0x1], 1 }
0x1505   :  { %2168 = vsyncpa [#allocation5], 1 }

</bundles_post_ra>
